<compile_context>
chip_gen: v7x
topology: tpu7x:2x2x1
jax: 0.10.0
libtpu: 0.0.40
codegen_flags: <defaults>
</compile_context>

<pallas_src>
import functools

import jax
import jax.numpy as jnp
from jax import lax
from jax.experimental import pallas as pl
from jax.experimental.pallas import tpu as pltpu


# ---------------------------------------------------------------------------
# Fused kernel: (Conv1d + folded BN + ReLU) x 2 for one (batch, length-tile)
# ---------------------------------------------------------------------------
def _double_conv_kernel(xw_ref, w1_ref, w2_ref, s1_ref, b1_ref, s2_ref, b2_ref,
                        o_ref, xcol_ref, hcol_ref,
                        *, L, TL, K, Cin, Cmid, Cout, pad):
    # NCL layout: channels on sublanes, length on lanes.
    #   xw_ref  : (1, 1, Cin, TL + 4*pad) bf16  halo'd input window for this tile
    #   w1_ref  : (Cmid, K*Cin)           bf16  w1[cm, k*Cin + ci] = W1[cm, ci, k]
    #   w2_ref  : (Cout, K*Cmid)          bf16
    #   s*/b*   : (C, 1)                  f32   folded BatchNorm scale / shift
    #   o_ref   : (1, Cout, TL)                 output tile (TL % 128 == 0 -> lane-dense)
    #   xcol_ref: (K*Cin, TL + 2*pad)     bf16  stage-1 im2col slab (scratch)
    #   hcol_ref: (K*Cmid, TL)            bf16  stage-2 im2col slab (scratch)
    l = pl.program_id(1)
    TLH = TL + 2 * pad                       # stage-1 output width (halo for 2nd conv)

    xwin = xw_ref[0, 0]                      # (Cin, TL + 4*pad)

    # --- stage 1: Conv1d(Cin -> Cmid) as ONE fat MXU matmul over an im2col slab ----
    # Static lane slices of the window; each tap is a full-lane-width store at the
    # packed-sublane-aligned offset k*Cin.
    for k in range(K):
        xcol_ref[k * Cin:(k + 1) * Cin, :] = xwin[:, k:k + TLH]
    acc1 = jnp.dot(w1_ref[...], xcol_ref[...], preferred_element_type=jnp.float32)
    y1 = jnp.maximum(acc1 * s1_ref[...] + b1_ref[...], 0.0)         # BN + ReLU, f32

    # Halo positions outside [0, L) are the SECOND conv's zero padding: the raw conv
    # output there is 0, but BN-shift + ReLU would make it relu(b1) -> force to 0.
    pos = l * TL - pad + lax.broadcasted_iota(jnp.int32, y1.shape, 1)
    y1 = jnp.where((pos >= 0) & (pos < L), y1, 0.0)
    y1_bf = y1.astype(jnp.bfloat16)                                  # (Cmid, TLH)

    # --- stage 2: Conv1d(Cmid -> Cout) over the central TL positions ----------------
    for k in range(K):
        hcol_ref[k * Cmid:(k + 1) * Cmid, :] = y1_bf[:, k:k + TL]
    acc2 = jnp.dot(w2_ref[...], hcol_ref[...], preferred_element_type=jnp.float32)
    y2 = jnp.maximum(acc2 * s2_ref[...] + b2_ref[...], 0.0)         # BN + ReLU, f32
    o_ref[0] = y2.astype(o_ref.dtype)


# ---------------------------------------------------------------------------
# Wrapper: DoubleConv.forward  (x: (N, C_in, L) -> (N, C_out, L), NCL everywhere)
# ---------------------------------------------------------------------------
def double_conv_forward(x_ncl, params, *, tile_l=None, out_dtype=jnp.float32):
    N, Cin, L = x_ncl.shape
    w1, w2 = params["w1"], params["w2"]          # PyTorch layout (Cout, Cin, K)
    Cmid, Cin_w, K = w1.shape
    Cout, Cmid_w, K2 = w2.shape
    assert Cin_w == Cin and Cmid_w == Cmid and K2 == K
    pad = (K - 1) // 2

    # Length tile: prefer a lane-dense (multiple-of-128) divisor of L.
    if tile_l is None:
        tile_l = L
        for cand in (512, 384, 256, 128):
            if L % cand == 0:
                tile_l = cand
                break
    TL = tile_l
    assert L % TL == 0, (L, TL)
    n_l = L // TL
    TLH = TL + 2 * pad                       # halo'd stage-1 output width
    XW = TL + 4 * pad                        # halo'd input window width

    # --- wrapper-side prep (all on the small (N, Cin, L) input / (C, C, K) weights) --
    x_bf = x_ncl.astype(jnp.bfloat16)
    x_pad = jnp.pad(x_bf, ((0, 0), (0, 0), (2 * pad, 2 * pad)))      # (N, Cin, L + 4p)
    # Overlapping halo windows: x_win[n, l, :, j] = x_pad[n, :, l*TL + j]
    win_idx = (jnp.arange(n_l) * TL)[:, None] + jnp.arange(XW)[None, :]
    x_win = jnp.transpose(x_pad[:, :, win_idx], (0, 2, 1, 3))        # (N, n_l, Cin, XW)

    # im2col-flattened weights: w2d[co, k*C + ci] = W[co, ci, k]
    w1_2d = jnp.transpose(w1, (0, 2, 1)).reshape(Cmid, K * Cin).astype(jnp.bfloat16)
    w2_2d = jnp.transpose(w2, (0, 2, 1)).reshape(Cout, K * Cmid).astype(jnp.bfloat16)
    s1 = params["s1"].reshape(Cmid, 1).astype(jnp.float32)
    b1 = params["sh1"].reshape(Cmid, 1).astype(jnp.float32)
    s2 = params["s2"].reshape(Cout, 1).astype(jnp.float32)
    b2 = params["sh2"].reshape(Cout, 1).astype(jnp.float32)

    # Scoped VMEM sized from the actual per-step footprint (independent of L).
    out_isize = jnp.dtype(out_dtype).itemsize
    vmem_bytes = (
        2 * Cin * XW * 2                                   # input window (dbl-buffered)
        + 2 * Cout * TL * out_isize                        # output block
        + 2 * (Cmid * K * Cin + Cout * K * Cmid) * 2       # weights
        + 2 * 2 * (Cmid + Cout) * 4                        # BN scale/shift
        + K * Cin * TLH * 2                                # xcol scratch
        + K * Cmid * TL * 2                                # hcol scratch
    )
    vmem_limit = int(min(64 * 1024 * 1024, max(16 * 1024 * 1024, 2 * vmem_bytes)))

    kernel = functools.partial(_double_conv_kernel, L=L, TL=TL, K=K,
                               Cin=Cin, Cmid=Cmid, Cout=Cout, pad=pad)
    return pl.pallas_call(
        kernel,
        out_shape=jax.ShapeDtypeStruct((N, Cout, L), out_dtype),
        grid=(N, n_l),
        in_specs=[
            pl.BlockSpec((1, 1, Cin, XW), lambda n, l: (n, l, 0, 0)),
            pl.BlockSpec((Cmid, K * Cin), lambda n, l: (0, 0)),
            pl.BlockSpec((Cout, K * Cmid), lambda n, l: (0, 0)),
            pl.BlockSpec((Cmid, 1), lambda n, l: (0, 0)),
            pl.BlockSpec((Cmid, 1), lambda n, l: (0, 0)),
            pl.BlockSpec((Cout, 1), lambda n, l: (0, 0)),
            pl.BlockSpec((Cout, 1), lambda n, l: (0, 0)),
        ],
        out_specs=pl.BlockSpec((1, Cout, TL), lambda n, l: (n, 0, l)),
        scratch_shapes=[
            pltpu.VMEM((K * Cin, TLH), jnp.bfloat16),
            pltpu.VMEM((K * Cmid, TL), jnp.bfloat16),
        ],
        compiler_params=pltpu.CompilerParams(
            dimension_semantics=("parallel", "parallel"),
            vmem_limit_bytes=vmem_limit,
        ),
    )(x_win, w1_2d, w2_2d, s1, b1, s2, b2)


# ---------------------------------------------------------------------------
# Pure-JAX reference (lax.conv) for correctness checking
# ---------------------------------------------------------------------------
def _ref_conv1d(x_ncl, w_oik, pad):
    return lax.conv_general_dilated(
        x_ncl, w_oik, window_strides=(1,), padding=[(pad, pad)],
        dimension_numbers=("NCH", "OIH", "NCH"),
        precision=lax.Precision.HIGHEST)


def ref_double_conv(x_ncl, p):
    def bf(a):  # mirror the kernel's bf16 operand / intermediate rounding
        return a.astype(jnp.bfloat16).astype(jnp.float32)
    pad = (p["w1"].shape[-1] - 1) // 2
    h = _ref_conv1d(bf(x_ncl), bf(p["w1"]), pad)
    h = jnp.maximum(h * p["s1"][None, :, None] + p["sh1"][None, :, None], 0.0)
    h = _ref_conv1d(bf(h), bf(p["w2"]), pad)
    h = jnp.maximum(h * p["s2"][None, :, None] + p["sh2"][None, :, None], 0.0)
    return h


# ---------------------------------------------------------------------------
# Deterministic parameter construction (shapes from DoubleConv.__init__)
# ---------------------------------------------------------------------------
def init_params(key, in_channels, out_channels, mid_channels=None, K=31):
    mid = mid_channels or out_channels
    ks = jax.random.split(key, 10)
    eps = 1e-5

    def uni(k, shape, fan):
        bound = 1.0 / jnp.sqrt(fan)
        return jax.random.uniform(k, shape, jnp.float32, -bound, bound)

    # Conv1d weights in PyTorch layout (Cout, Cin, K), f32 master copies
    w1 = uni(ks[0], (mid, in_channels, K), in_channels * K)
    w2 = uni(ks[1], (out_channels, mid, K), mid * K)
    # BatchNorm1d (inference mode) -> folded per-channel scale/shift (f32)
    g1 = 1.0 + 0.1 * jax.random.normal(ks[2], (mid,), jnp.float32)
    be1 = 0.1 * jax.random.normal(ks[3], (mid,), jnp.float32)
    m1 = 0.1 * jax.random.normal(ks[4], (mid,), jnp.float32)
    v1 = jnp.abs(1.0 + 0.1 * jax.random.normal(ks[5], (mid,), jnp.float32))
    g2 = 1.0 + 0.1 * jax.random.normal(ks[6], (out_channels,), jnp.float32)
    be2 = 0.1 * jax.random.normal(ks[7], (out_channels,), jnp.float32)
    m2 = 0.1 * jax.random.normal(ks[8], (out_channels,), jnp.float32)
    v2 = jnp.abs(1.0 + 0.1 * jax.random.normal(ks[9], (out_channels,), jnp.float32))
    s1 = g1 / jnp.sqrt(v1 + eps)
    s2 = g2 / jnp.sqrt(v2 + eps)
    return dict(w1=w1, w2=w2,
                s1=s1, sh1=be1 - m1 * s1,
                s2=s2, sh2=be2 - m2 * s2)


if __name__ == "__main__":
    in_channels, out_channels = 16, 16
    N, L = 2, 256                              # TL=128 -> exercises the tiled/halo path

    key = jax.random.PRNGKey(0)
    kx, kp = jax.random.split(key)
    x = jax.random.normal(kx, (N, in_channels, L), jnp.float32)
    params = init_params(kp, in_channels, out_channels)

    fwd = jax.jit(double_conv_forward)
    out = jax.block_until_ready(fwd(x, params))

    ref = ref_double_conv(x, params)
    assert out.shape == (N, out_channels, L), out.shape
    max_err = float(jnp.max(jnp.abs(out - ref)))
    assert jnp.allclose(out, ref, atol=2e-2, rtol=2e-2), max_err
    print("KERNEL_OK")
</pallas_src>

<mosaic_0001>
module attributes {stable_mosaic.version = 11 : i64} {
  func.func @_double_conv_kernel(%arg0: i32, %arg1: i32, %arg2: memref<1x1x16x316xbf16, #tpu.memory_space<vmem>>, %arg3: memref<16x496xbf16, #tpu.memory_space<vmem>>, %arg4: memref<16x496xbf16, #tpu.memory_space<vmem>>, %arg5: memref<16x1xf32, #tpu.memory_space<vmem>>, %arg6: memref<16x1xf32, #tpu.memory_space<vmem>>, %arg7: memref<16x1xf32, #tpu.memory_space<vmem>>, %arg8: memref<16x1xf32, #tpu.memory_space<vmem>>, %arg9: memref<1x16x256xf32, #tpu.memory_space<vmem>>, %arg10: memref<496x286xbf16, #tpu.memory_space<vmem>>, %arg11: memref<496x256xbf16, #tpu.memory_space<vmem>>) attributes {dimension_semantics = [#tpu.dimension_semantics<parallel>, #tpu.dimension_semantics<parallel>], iteration_bounds = array<i64: 2, 1>, scalar_prefetch = 0 : i64, scratch_operands = 2 : i64, tpu.core_type = #tpu.core_type<tc>, window_params = [{transform_indices = @transform_0, window_bounds = array<i64: 1, 1, 16, 316>}, {pipeline_mode = #tpu.pipeline_mode<synchronous>, transform_indices = @transform_1, window_bounds = array<i64: 16, 496>}, {pipeline_mode = #tpu.pipeline_mode<synchronous>, transform_indices = @transform_2, window_bounds = array<i64: 16, 496>}, {pipeline_mode = #tpu.pipeline_mode<synchronous>, transform_indices = @transform_3, window_bounds = array<i64: 16, 1>}, {pipeline_mode = #tpu.pipeline_mode<synchronous>, transform_indices = @transform_4, window_bounds = array<i64: 16, 1>}, {pipeline_mode = #tpu.pipeline_mode<synchronous>, transform_indices = @transform_5, window_bounds = array<i64: 16, 1>}, {pipeline_mode = #tpu.pipeline_mode<synchronous>, transform_indices = @transform_6, window_bounds = array<i64: 16, 1>}, {transform_indices = @transform_7, window_bounds = array<i64: 1, 16, 256>}]} {
    %c0 = arith.constant 0 : index
    %c0_0 = arith.constant 0 : index
    %c0_1 = arith.constant 0 : index
    %c0_2 = arith.constant 0 : index
    %0 = vector.load %arg2[%c0, %c0_0, %c0_1, %c0_2] : memref<1x1x16x316xbf16, #tpu.memory_space<vmem>>, vector<1x1x16x316xbf16>
    %1 = vector.shape_cast %0 : vector<1x1x16x316xbf16> to vector<16x316xbf16>
    %2 = vector.extract_strided_slice %1 {offsets = [0, 0], sizes = [16, 286], strides = [1, 1]} : vector<16x316xbf16> to vector<16x286xbf16>
    %c0_3 = arith.constant 0 : index
    %c0_4 = arith.constant 0 : index
    %3 = vector.load %arg10[%c0_3, %c0_4] : memref<496x286xbf16, #tpu.memory_space<vmem>>, vector<16x286xbf16>
    tpu.vector_store %arg10[%c0_3, %c0_4], %2 {strides = array<i32>} : memref<496x286xbf16, #tpu.memory_space<vmem>>, vector<16x286xbf16>,
    %4 = vector.extract_strided_slice %1 {offsets = [0, 1], sizes = [16, 286], strides = [1, 1]} : vector<16x316xbf16> to vector<16x286xbf16>
    %c16 = arith.constant 16 : index
    %c0_5 = arith.constant 0 : index
    %5 = vector.load %arg10[%c16, %c0_5] : memref<496x286xbf16, #tpu.memory_space<vmem>>, vector<16x286xbf16>
    tpu.vector_store %arg10[%c16, %c0_5], %4 {strides = array<i32>} : memref<496x286xbf16, #tpu.memory_space<vmem>>, vector<16x286xbf16>,
    %6 = vector.extract_strided_slice %1 {offsets = [0, 2], sizes = [16, 286], strides = [1, 1]} : vector<16x316xbf16> to vector<16x286xbf16>
    %c32 = arith.constant 32 : index
    %c0_6 = arith.constant 0 : index
    %7 = vector.load %arg10[%c32, %c0_6] : memref<496x286xbf16, #tpu.memory_space<vmem>>, vector<16x286xbf16>
    tpu.vector_store %arg10[%c32, %c0_6], %6 {strides = array<i32>} : memref<496x286xbf16, #tpu.memory_space<vmem>>, vector<16x286xbf16>,
    %8 = vector.extract_strided_slice %1 {offsets = [0, 3], sizes = [16, 286], strides = [1, 1]} : vector<16x316xbf16> to vector<16x286xbf16>
    %c48 = arith.constant 48 : index
    %c0_7 = arith.constant 0 : index
    %9 = vector.load %arg10[%c48, %c0_7] : memref<496x286xbf16, #tpu.memory_space<vmem>>, vector<16x286xbf16>
    tpu.vector_store %arg10[%c48, %c0_7], %8 {strides = array<i32>} : memref<496x286xbf16, #tpu.memory_space<vmem>>, vector<16x286xbf16>,
    %10 = vector.extract_strided_slice %1 {offsets = [0, 4], sizes = [16, 286], strides = [1, 1]} : vector<16x316xbf16> to vector<16x286xbf16>
    %c64 = arith.constant 64 : index
    %c0_8 = arith.constant 0 : index
    %11 = vector.load %arg10[%c64, %c0_8] : memref<496x286xbf16, #tpu.memory_space<vmem>>, vector<16x286xbf16>
    tpu.vector_store %arg10[%c64, %c0_8], %10 {strides = array<i32>} : memref<496x286xbf16, #tpu.memory_space<vmem>>, vector<16x286xbf16>,
    %12 = vector.extract_strided_slice %1 {offsets = [0, 5], sizes = [16, 286], strides = [1, 1]} : vector<16x316xbf16> to vector<16x286xbf16>
    %c80 = arith.constant 80 : index
    %c0_9 = arith.constant 0 : index
    %13 = vector.load %arg10[%c80, %c0_9] : memref<496x286xbf16, #tpu.memory_space<vmem>>, vector<16x286xbf16>
    tpu.vector_store %arg10[%c80, %c0_9], %12 {strides = array<i32>} : memref<496x286xbf16, #tpu.memory_space<vmem>>, vector<16x286xbf16>,
    %14 = vector.extract_strided_slice %1 {offsets = [0, 6], sizes = [16, 286], strides = [1, 1]} : vector<16x316xbf16> to vector<16x286xbf16>
    %c96 = arith.constant 96 : index
    %c0_10 = arith.constant 0 : index
    %15 = vector.load %arg10[%c96, %c0_10] : memref<496x286xbf16, #tpu.memory_space<vmem>>, vector<16x286xbf16>
    tpu.vector_store %arg10[%c96, %c0_10], %14 {strides = array<i32>} : memref<496x286xbf16, #tpu.memory_space<vmem>>, vector<16x286xbf16>,
    %16 = vector.extract_strided_slice %1 {offsets = [0, 7], sizes = [16, 286], strides = [1, 1]} : vector<16x316xbf16> to vector<16x286xbf16>
    %c112 = arith.constant 112 : index
    %c0_11 = arith.constant 0 : index
    %17 = vector.load %arg10[%c112, %c0_11] : memref<496x286xbf16, #tpu.memory_space<vmem>>, vector<16x286xbf16>
    tpu.vector_store %arg10[%c112, %c0_11], %16 {strides = array<i32>} : memref<496x286xbf16, #tpu.memory_space<vmem>>, vector<16x286xbf16>,
    %18 = vector.extract_strided_slice %1 {offsets = [0, 8], sizes = [16, 286], strides = [1, 1]} : vector<16x316xbf16> to vector<16x286xbf16>
    %c128 = arith.constant 128 : index
    %c0_12 = arith.constant 0 : index
    %19 = vector.load %arg10[%c128, %c0_12] : memref<496x286xbf16, #tpu.memory_space<vmem>>, vector<16x286xbf16>
    tpu.vector_store %arg10[%c128, %c0_12], %18 {strides = array<i32>} : memref<496x286xbf16, #tpu.memory_space<vmem>>, vector<16x286xbf16>,
    %20 = vector.extract_strided_slice %1 {offsets = [0, 9], sizes = [16, 286], strides = [1, 1]} : vector<16x316xbf16> to vector<16x286xbf16>
    %c144 = arith.constant 144 : index
    %c0_13 = arith.constant 0 : index
    %21 = vector.load %arg10[%c144, %c0_13] : memref<496x286xbf16, #tpu.memory_space<vmem>>, vector<16x286xbf16>
    tpu.vector_store %arg10[%c144, %c0_13], %20 {strides = array<i32>} : memref<496x286xbf16, #tpu.memory_space<vmem>>, vector<16x286xbf16>,
    %22 = vector.extract_strided_slice %1 {offsets = [0, 10], sizes = [16, 286], strides = [1, 1]} : vector<16x316xbf16> to vector<16x286xbf16>
    %c160 = arith.constant 160 : index
    %c0_14 = arith.constant 0 : index
    %23 = vector.load %arg10[%c160, %c0_14] : memref<496x286xbf16, #tpu.memory_space<vmem>>, vector<16x286xbf16>
    tpu.vector_store %arg10[%c160, %c0_14], %22 {strides = array<i32>} : memref<496x286xbf16, #tpu.memory_space<vmem>>, vector<16x286xbf16>,
    %24 = vector.extract_strided_slice %1 {offsets = [0, 11], sizes = [16, 286], strides = [1, 1]} : vector<16x316xbf16> to vector<16x286xbf16>
    %c176 = arith.constant 176 : index
    %c0_15 = arith.constant 0 : index
    %25 = vector.load %arg10[%c176, %c0_15] : memref<496x286xbf16, #tpu.memory_space<vmem>>, vector<16x286xbf16>
    tpu.vector_store %arg10[%c176, %c0_15], %24 {strides = array<i32>} : memref<496x286xbf16, #tpu.memory_space<vmem>>, vector<16x286xbf16>,
    %26 = vector.extract_strided_slice %1 {offsets = [0, 12], sizes = [16, 286], strides = [1, 1]} : vector<16x316xbf16> to vector<16x286xbf16>
    %c192 = arith.constant 192 : index
    %c0_16 = arith.constant 0 : index
    %27 = vector.load %arg10[%c192, %c0_16] : memref<496x286xbf16, #tpu.memory_space<vmem>>, vector<16x286xbf16>
    tpu.vector_store %arg10[%c192, %c0_16], %26 {strides = array<i32>} : memref<496x286xbf16, #tpu.memory_space<vmem>>, vector<16x286xbf16>,
    %28 = vector.extract_strided_slice %1 {offsets = [0, 13], sizes = [16, 286], strides = [1, 1]} : vector<16x316xbf16> to vector<16x286xbf16>
    %c208 = arith.constant 208 : index
    %c0_17 = arith.constant 0 : index
    %29 = vector.load %arg10[%c208, %c0_17] : memref<496x286xbf16, #tpu.memory_space<vmem>>, vector<16x286xbf16>
    tpu.vector_store %arg10[%c208, %c0_17], %28 {strides = array<i32>} : memref<496x286xbf16, #tpu.memory_space<vmem>>, vector<16x286xbf16>,
    %30 = vector.extract_strided_slice %1 {offsets = [0, 14], sizes = [16, 286], strides = [1, 1]} : vector<16x316xbf16> to vector<16x286xbf16>
    %c224 = arith.constant 224 : index
    %c0_18 = arith.constant 0 : index
    %31 = vector.load %arg10[%c224, %c0_18] : memref<496x286xbf16, #tpu.memory_space<vmem>>, vector<16x286xbf16>
    tpu.vector_store %arg10[%c224, %c0_18], %30 {strides = array<i32>} : memref<496x286xbf16, #tpu.memory_space<vmem>>, vector<16x286xbf16>,
    %32 = vector.extract_strided_slice %1 {offsets = [0, 15], sizes = [16, 286], strides = [1, 1]} : vector<16x316xbf16> to vector<16x286xbf16>
    %c240 = arith.constant 240 : index
    %c0_19 = arith.constant 0 : index
    %33 = vector.load %arg10[%c240, %c0_19] : memref<496x286xbf16, #tpu.memory_space<vmem>>, vector<16x286xbf16>
    tpu.vector_store %arg10[%c240, %c0_19], %32 {strides = array<i32>} : memref<496x286xbf16, #tpu.memory_space<vmem>>, vector<16x286xbf16>,
    %34 = vector.extract_strided_slice %1 {offsets = [0, 16], sizes = [16, 286], strides = [1, 1]} : vector<16x316xbf16> to vector<16x286xbf16>
    %c256 = arith.constant 256 : index
    %c0_20 = arith.constant 0 : index
    %35 = vector.load %arg10[%c256, %c0_20] : memref<496x286xbf16, #tpu.memory_space<vmem>>, vector<16x286xbf16>
    tpu.vector_store %arg10[%c256, %c0_20], %34 {strides = array<i32>} : memref<496x286xbf16, #tpu.memory_space<vmem>>, vector<16x286xbf16>,
    %36 = vector.extract_strided_slice %1 {offsets = [0, 17], sizes = [16, 286], strides = [1, 1]} : vector<16x316xbf16> to vector<16x286xbf16>
    %c272 = arith.constant 272 : index
    %c0_21 = arith.constant 0 : index
    %37 = vector.load %arg10[%c272, %c0_21] : memref<496x286xbf16, #tpu.memory_space<vmem>>, vector<16x286xbf16>
    tpu.vector_store %arg10[%c272, %c0_21], %36 {strides = array<i32>} : memref<496x286xbf16, #tpu.memory_space<vmem>>, vector<16x286xbf16>,
    %38 = vector.extract_strided_slice %1 {offsets = [0, 18], sizes = [16, 286], strides = [1, 1]} : vector<16x316xbf16> to vector<16x286xbf16>
    %c288 = arith.constant 288 : index
    %c0_22 = arith.constant 0 : index
    %39 = vector.load %arg10[%c288, %c0_22] : memref<496x286xbf16, #tpu.memory_space<vmem>>, vector<16x286xbf16>
    tpu.vector_store %arg10[%c288, %c0_22], %38 {strides = array<i32>} : memref<496x286xbf16, #tpu.memory_space<vmem>>, vector<16x286xbf16>,
    %40 = vector.extract_strided_slice %1 {offsets = [0, 19], sizes = [16, 286], strides = [1, 1]} : vector<16x316xbf16> to vector<16x286xbf16>
    %c304 = arith.constant 304 : index
    %c0_23 = arith.constant 0 : index
    %41 = vector.load %arg10[%c304, %c0_23] : memref<496x286xbf16, #tpu.memory_space<vmem>>, vector<16x286xbf16>
    tpu.vector_store %arg10[%c304, %c0_23], %40 {strides = array<i32>} : memref<496x286xbf16, #tpu.memory_space<vmem>>, vector<16x286xbf16>,
    %42 = vector.extract_strided_slice %1 {offsets = [0, 20], sizes = [16, 286], strides = [1, 1]} : vector<16x316xbf16> to vector<16x286xbf16>
    %c320 = arith.constant 320 : index
    %c0_24 = arith.constant 0 : index
    %43 = vector.load %arg10[%c320, %c0_24] : memref<496x286xbf16, #tpu.memory_space<vmem>>, vector<16x286xbf16>
    tpu.vector_store %arg10[%c320, %c0_24], %42 {strides = array<i32>} : memref<496x286xbf16, #tpu.memory_space<vmem>>, vector<16x286xbf16>,
    %44 = vector.extract_strided_slice %1 {offsets = [0, 21], sizes = [16, 286], strides = [1, 1]} : vector<16x316xbf16> to vector<16x286xbf16>
    %c336 = arith.constant 336 : index
    %c0_25 = arith.constant 0 : index
    %45 = vector.load %arg10[%c336, %c0_25] : memref<496x286xbf16, #tpu.memory_space<vmem>>, vector<16x286xbf16>
    tpu.vector_store %arg10[%c336, %c0_25], %44 {strides = array<i32>} : memref<496x286xbf16, #tpu.memory_space<vmem>>, vector<16x286xbf16>,
    %46 = vector.extract_strided_slice %1 {offsets = [0, 22], sizes = [16, 286], strides = [1, 1]} : vector<16x316xbf16> to vector<16x286xbf16>
    %c352 = arith.constant 352 : index
    %c0_26 = arith.constant 0 : index
    %47 = vector.load %arg10[%c352, %c0_26] : memref<496x286xbf16, #tpu.memory_space<vmem>>, vector<16x286xbf16>
    tpu.vector_store %arg10[%c352, %c0_26], %46 {strides = array<i32>} : memref<496x286xbf16, #tpu.memory_space<vmem>>, vector<16x286xbf16>,
    %48 = vector.extract_strided_slice %1 {offsets = [0, 23], sizes = [16, 286], strides = [1, 1]} : vector<16x316xbf16> to vector<16x286xbf16>
    %c368 = arith.constant 368 : index
    %c0_27 = arith.constant 0 : index
    %49 = vector.load %arg10[%c368, %c0_27] : memref<496x286xbf16, #tpu.memory_space<vmem>>, vector<16x286xbf16>
    tpu.vector_store %arg10[%c368, %c0_27], %48 {strides = array<i32>} : memref<496x286xbf16, #tpu.memory_space<vmem>>, vector<16x286xbf16>,
    %50 = vector.extract_strided_slice %1 {offsets = [0, 24], sizes = [16, 286], strides = [1, 1]} : vector<16x316xbf16> to vector<16x286xbf16>
    %c384 = arith.constant 384 : index
    %c0_28 = arith.constant 0 : index
    %51 = vector.load %arg10[%c384, %c0_28] : memref<496x286xbf16, #tpu.memory_space<vmem>>, vector<16x286xbf16>
    tpu.vector_store %arg10[%c384, %c0_28], %50 {strides = array<i32>} : memref<496x286xbf16, #tpu.memory_space<vmem>>, vector<16x286xbf16>,
    %52 = vector.extract_strided_slice %1 {offsets = [0, 25], sizes = [16, 286], strides = [1, 1]} : vector<16x316xbf16> to vector<16x286xbf16>
    %c400 = arith.constant 400 : index
    %c0_29 = arith.constant 0 : index
    %53 = vector.load %arg10[%c400, %c0_29] : memref<496x286xbf16, #tpu.memory_space<vmem>>, vector<16x286xbf16>
    tpu.vector_store %arg10[%c400, %c0_29], %52 {strides = array<i32>} : memref<496x286xbf16, #tpu.memory_space<vmem>>, vector<16x286xbf16>,
    %54 = vector.extract_strided_slice %1 {offsets = [0, 26], sizes = [16, 286], strides = [1, 1]} : vector<16x316xbf16> to vector<16x286xbf16>
    %c416 = arith.constant 416 : index
    %c0_30 = arith.constant 0 : index
    %55 = vector.load %arg10[%c416, %c0_30] : memref<496x286xbf16, #tpu.memory_space<vmem>>, vector<16x286xbf16>
    tpu.vector_store %arg10[%c416, %c0_30], %54 {strides = array<i32>} : memref<496x286xbf16, #tpu.memory_space<vmem>>, vector<16x286xbf16>,
    %56 = vector.extract_strided_slice %1 {offsets = [0, 27], sizes = [16, 286], strides = [1, 1]} : vector<16x316xbf16> to vector<16x286xbf16>
    %c432 = arith.constant 432 : index
    %c0_31 = arith.constant 0 : index
    %57 = vector.load %arg10[%c432, %c0_31] : memref<496x286xbf16, #tpu.memory_space<vmem>>, vector<16x286xbf16>
    tpu.vector_store %arg10[%c432, %c0_31], %56 {strides = array<i32>} : memref<496x286xbf16, #tpu.memory_space<vmem>>, vector<16x286xbf16>,
    %58 = vector.extract_strided_slice %1 {offsets = [0, 28], sizes = [16, 286], strides = [1, 1]} : vector<16x316xbf16> to vector<16x286xbf16>
    %c448 = arith.constant 448 : index
    %c0_32 = arith.constant 0 : index
    %59 = vector.load %arg10[%c448, %c0_32] : memref<496x286xbf16, #tpu.memory_space<vmem>>, vector<16x286xbf16>
    tpu.vector_store %arg10[%c448, %c0_32], %58 {strides = array<i32>} : memref<496x286xbf16, #tpu.memory_space<vmem>>, vector<16x286xbf16>,
    %60 = vector.extract_strided_slice %1 {offsets = [0, 29], sizes = [16, 286], strides = [1, 1]} : vector<16x316xbf16> to vector<16x286xbf16>
    %c464 = arith.constant 464 : index
    %c0_33 = arith.constant 0 : index
    %61 = vector.load %arg10[%c464, %c0_33] : memref<496x286xbf16, #tpu.memory_space<vmem>>, vector<16x286xbf16>
    tpu.vector_store %arg10[%c464, %c0_33], %60 {strides = array<i32>} : memref<496x286xbf16, #tpu.memory_space<vmem>>, vector<16x286xbf16>,
    %62 = vector.extract_strided_slice %1 {offsets = [0, 30], sizes = [16, 286], strides = [1, 1]} : vector<16x316xbf16> to vector<16x286xbf16>
    %c480 = arith.constant 480 : index
    %c0_34 = arith.constant 0 : index
    %63 = vector.load %arg10[%c480, %c0_34] : memref<496x286xbf16, #tpu.memory_space<vmem>>, vector<16x286xbf16>
    tpu.vector_store %arg10[%c480, %c0_34], %62 {strides = array<i32>} : memref<496x286xbf16, #tpu.memory_space<vmem>>, vector<16x286xbf16>,
    %c0_35 = arith.constant 0 : index
    %c0_36 = arith.constant 0 : index
    %64 = vector.load %arg3[%c0_35, %c0_36] : memref<16x496xbf16, #tpu.memory_space<vmem>>, vector<16x496xbf16>
    %c0_37 = arith.constant 0 : index
    %c0_38 = arith.constant 0 : index
    %65 = vector.load %arg10[%c0_37, %c0_38] : memref<496x286xbf16, #tpu.memory_space<vmem>>, vector<496x286xbf16>
    %cst = arith.constant dense<0.000000e+00> : vector<16x286xf32>
    %66 = tpu.matmul %64, %65, %cst {dimension_numbers = #tpu.dot_dimension_numbers<[1], [0], [0], [1], [0, 0, 1, 1], [], []>} : vector<16x496xbf16>, vector<496x286xbf16>, vector<16x286xf32> -> vector<16x286xf32>
    %c0_39 = arith.constant 0 : index
    %c0_40 = arith.constant 0 : index
    %67 = vector.load %arg5[%c0_39, %c0_40] : memref<16x1xf32, #tpu.memory_space<vmem>>, vector<16x1xf32>
    %68 = vector.broadcast %67 : vector<16x1xf32> to vector<16x286xf32>
    %69 = arith.mulf %66, %68 : vector<16x286xf32>
    %c0_41 = arith.constant 0 : index
    %c0_42 = arith.constant 0 : index
    %70 = vector.load %arg6[%c0_41, %c0_42] : memref<16x1xf32, #tpu.memory_space<vmem>>, vector<16x1xf32>
    %71 = vector.broadcast %70 : vector<16x1xf32> to vector<16x286xf32>
    %72 = arith.addf %69, %71 : vector<16x286xf32>
    %cst_43 = arith.constant 0.000000e+00 : f32
    %73 = vector.broadcast %cst_43 : f32 to vector<16x286xf32>
    %74 = arith.maximumf %72, %73 : vector<16x286xf32>
    %c256_i32 = arith.constant 256 : i32
    %75 = arith.muli %arg1, %c256_i32 : i32
    %c15_i32 = arith.constant 15 : i32
    %76 = arith.subi %75, %c15_i32 : i32
    %77 = tpu.iota {dimensions = array<i32: 1>} : vector<16x286xi32>
    %78 = vector.broadcast %76 : i32 to vector<16x286xi32>
    %79 = arith.addi %78, %77 : vector<16x286xi32>
    %c0_i32 = arith.constant 0 : i32
    %80 = vector.broadcast %c0_i32 : i32 to vector<16x286xi32>
    %81 = arith.cmpi sge, %79, %80 : vector<16x286xi32>
    %c256_i32_44 = arith.constant 256 : i32
    %82 = vector.broadcast %c256_i32_44 : i32 to vector<16x286xi32>
    %83 = arith.cmpi slt, %79, %82 : vector<16x286xi32>
    %84 = arith.andi %81, %83 : vector<16x286xi1>
    %cst_45 = arith.constant 0.000000e+00 : f32
    %85 = vector.broadcast %cst_45 : f32 to vector<16x286xf32>
    %86 = arith.select %84, %74, %85 : vector<16x286xi1>, vector<16x286xf32>
    %87 = arith.truncf %86 : vector<16x286xf32> to vector<16x286xbf16>
    %88 = vector.extract_strided_slice %87 {offsets = [0, 0], sizes = [16, 256], strides = [1, 1]} : vector<16x286xbf16> to vector<16x256xbf16>
    %c0_46 = arith.constant 0 : index
    %c0_47 = arith.constant 0 : index
    %89 = vector.load %arg11[%c0_46, %c0_47] : memref<496x256xbf16, #tpu.memory_space<vmem>>, vector<16x256xbf16>
    tpu.vector_store %arg11[%c0_46, %c0_47], %88 {strides = array<i32>} : memref<496x256xbf16, #tpu.memory_space<vmem>>, vector<16x256xbf16>,
    %90 = vector.extract_strided_slice %87 {offsets = [0, 1], sizes = [16, 256], strides = [1, 1]} : vector<16x286xbf16> to vector<16x256xbf16>
    %c16_48 = arith.constant 16 : index
    %c0_49 = arith.constant 0 : index
    %91 = vector.load %arg11[%c16_48, %c0_49] : memref<496x256xbf16, #tpu.memory_space<vmem>>, vector<16x256xbf16>
    tpu.vector_store %arg11[%c16_48, %c0_49], %90 {strides = array<i32>} : memref<496x256xbf16, #tpu.memory_space<vmem>>, vector<16x256xbf16>,
    %92 = vector.extract_strided_slice %87 {offsets = [0, 2], sizes = [16, 256], strides = [1, 1]} : vector<16x286xbf16> to vector<16x256xbf16>
    %c32_50 = arith.constant 32 : index
    %c0_51 = arith.constant 0 : index
    %93 = vector.load %arg11[%c32_50, %c0_51] : memref<496x256xbf16, #tpu.memory_space<vmem>>, vector<16x256xbf16>
    tpu.vector_store %arg11[%c32_50, %c0_51], %92 {strides = array<i32>} : memref<496x256xbf16, #tpu.memory_space<vmem>>, vector<16x256xbf16>,
    %94 = vector.extract_strided_slice %87 {offsets = [0, 3], sizes = [16, 256], strides = [1, 1]} : vector<16x286xbf16> to vector<16x256xbf16>
    %c48_52 = arith.constant 48 : index
    %c0_53 = arith.constant 0 : index
    %95 = vector.load %arg11[%c48_52, %c0_53] : memref<496x256xbf16, #tpu.memory_space<vmem>>, vector<16x256xbf16>
    tpu.vector_store %arg11[%c48_52, %c0_53], %94 {strides = array<i32>} : memref<496x256xbf16, #tpu.memory_space<vmem>>, vector<16x256xbf16>,
    %96 = vector.extract_strided_slice %87 {offsets = [0, 4], sizes = [16, 256], strides = [1, 1]} : vector<16x286xbf16> to vector<16x256xbf16>
    %c64_54 = arith.constant 64 : index
    %c0_55 = arith.constant 0 : index
    %97 = vector.load %arg11[%c64_54, %c0_55] : memref<496x256xbf16, #tpu.memory_space<vmem>>, vector<16x256xbf16>
    tpu.vector_store %arg11[%c64_54, %c0_55], %96 {strides = array<i32>} : memref<496x256xbf16, #tpu.memory_space<vmem>>, vector<16x256xbf16>,
    %98 = vector.extract_strided_slice %87 {offsets = [0, 5], sizes = [16, 256], strides = [1, 1]} : vector<16x286xbf16> to vector<16x256xbf16>
    %c80_56 = arith.constant 80 : index
    %c0_57 = arith.constant 0 : index
    %99 = vector.load %arg11[%c80_56, %c0_57] : memref<496x256xbf16, #tpu.memory_space<vmem>>, vector<16x256xbf16>
    tpu.vector_store %arg11[%c80_56, %c0_57], %98 {strides = array<i32>} : memref<496x256xbf16, #tpu.memory_space<vmem>>, vector<16x256xbf16>,
    %100 = vector.extract_strided_slice %87 {offsets = [0, 6], sizes = [16, 256], strides = [1, 1]} : vector<16x286xbf16> to vector<16x256xbf16>
    %c96_58 = arith.constant 96 : index
    %c0_59 = arith.constant 0 : index
    %101 = vector.load %arg11[%c96_58, %c0_59] : memref<496x256xbf16, #tpu.memory_space<vmem>>, vector<16x256xbf16>
    tpu.vector_store %arg11[%c96_58, %c0_59], %100 {strides = array<i32>} : memref<496x256xbf16, #tpu.memory_space<vmem>>, vector<16x256xbf16>,
    %102 = vector.extract_strided_slice %87 {offsets = [0, 7], sizes = [16, 256], strides = [1, 1]} : vector<16x286xbf16> to vector<16x256xbf16>
    %c112_60 = arith.constant 112 : index
    %c0_61 = arith.constant 0 : index
    %103 = vector.load %arg11[%c112_60, %c0_61] : memref<496x256xbf16, #tpu.memory_space<vmem>>, vector<16x256xbf16>
    tpu.vector_store %arg11[%c112_60, %c0_61], %102 {strides = array<i32>} : memref<496x256xbf16, #tpu.memory_space<vmem>>, vector<16x256xbf16>,
    %104 = vector.extract_strided_slice %87 {offsets = [0, 8], sizes = [16, 256], strides = [1, 1]} : vector<16x286xbf16> to vector<16x256xbf16>
    %c128_62 = arith.constant 128 : index
    %c0_63 = arith.constant 0 : index
    %105 = vector.load %arg11[%c128_62, %c0_63] : memref<496x256xbf16, #tpu.memory_space<vmem>>, vector<16x256xbf16>
    tpu.vector_store %arg11[%c128_62, %c0_63], %104 {strides = array<i32>} : memref<496x256xbf16, #tpu.memory_space<vmem>>, vector<16x256xbf16>,
    %106 = vector.extract_strided_slice %87 {offsets = [0, 9], sizes = [16, 256], strides = [1, 1]} : vector<16x286xbf16> to vector<16x256xbf16>
    %c144_64 = arith.constant 144 : index
    %c0_65 = arith.constant 0 : index
    %107 = vector.load %arg11[%c144_64, %c0_65] : memref<496x256xbf16, #tpu.memory_space<vmem>>, vector<16x256xbf16>
    tpu.vector_store %arg11[%c144_64, %c0_65], %106 {strides = array<i32>} : memref<496x256xbf16, #tpu.memory_space<vmem>>, vector<16x256xbf16>,
    %108 = vector.extract_strided_slice %87 {offsets = [0, 10], sizes = [16, 256], strides = [1, 1]} : vector<16x286xbf16> to vector<16x256xbf16>
    %c160_66 = arith.constant 160 : index
    %c0_67 = arith.constant 0 : index
    %109 = vector.load %arg11[%c160_66, %c0_67] : memref<496x256xbf16, #tpu.memory_space<vmem>>, vector<16x256xbf16>
    tpu.vector_store %arg11[%c160_66, %c0_67], %108 {strides = array<i32>} : memref<496x256xbf16, #tpu.memory_space<vmem>>, vector<16x256xbf16>,
    %110 = vector.extract_strided_slice %87 {offsets = [0, 11], sizes = [16, 256], strides = [1, 1]} : vector<16x286xbf16> to vector<16x256xbf16>
    %c176_68 = arith.constant 176 : index
    %c0_69 = arith.constant 0 : index
    %111 = vector.load %arg11[%c176_68, %c0_69] : memref<496x256xbf16, #tpu.memory_space<vmem>>, vector<16x256xbf16>
    tpu.vector_store %arg11[%c176_68, %c0_69], %110 {strides = array<i32>} : memref<496x256xbf16, #tpu.memory_space<vmem>>, vector<16x256xbf16>,
    %112 = vector.extract_strided_slice %87 {offsets = [0, 12], sizes = [16, 256], strides = [1, 1]} : vector<16x286xbf16> to vector<16x256xbf16>
    %c192_70 = arith.constant 192 : index
    %c0_71 = arith.constant 0 : index
    %113 = vector.load %arg11[%c192_70, %c0_71] : memref<496x256xbf16, #tpu.memory_space<vmem>>, vector<16x256xbf16>
    tpu.vector_store %arg11[%c192_70, %c0_71], %112 {strides = array<i32>} : memref<496x256xbf16, #tpu.memory_space<vmem>>, vector<16x256xbf16>,
    %114 = vector.extract_strided_slice %87 {offsets = [0, 13], sizes = [16, 256], strides = [1, 1]} : vector<16x286xbf16> to vector<16x256xbf16>
    %c208_72 = arith.constant 208 : index
    %c0_73 = arith.constant 0 : index
    %115 = vector.load %arg11[%c208_72, %c0_73] : memref<496x256xbf16, #tpu.memory_space<vmem>>, vector<16x256xbf16>
    tpu.vector_store %arg11[%c208_72, %c0_73], %114 {strides = array<i32>} : memref<496x256xbf16, #tpu.memory_space<vmem>>, vector<16x256xbf16>,
    %116 = vector.extract_strided_slice %87 {offsets = [0, 14], sizes = [16, 256], strides = [1, 1]} : vector<16x286xbf16> to vector<16x256xbf16>
    %c224_74 = arith.constant 224 : index
    %c0_75 = arith.constant 0 : index
    %117 = vector.load %arg11[%c224_74, %c0_75] : memref<496x256xbf16, #tpu.memory_space<vmem>>, vector<16x256xbf16>
    tpu.vector_store %arg11[%c224_74, %c0_75], %116 {strides = array<i32>} : memref<496x256xbf16, #tpu.memory_space<vmem>>, vector<16x256xbf16>,
    %118 = vector.extract_strided_slice %87 {offsets = [0, 15], sizes = [16, 256], strides = [1, 1]} : vector<16x286xbf16> to vector<16x256xbf16>
    %c240_76 = arith.constant 240 : index
    %c0_77 = arith.constant 0 : index
    %119 = vector.load %arg11[%c240_76, %c0_77] : memref<496x256xbf16, #tpu.memory_space<vmem>>, vector<16x256xbf16>
    tpu.vector_store %arg11[%c240_76, %c0_77], %118 {strides = array<i32>} : memref<496x256xbf16, #tpu.memory_space<vmem>>, vector<16x256xbf16>,
    %120 = vector.extract_strided_slice %87 {offsets = [0, 16], sizes = [16, 256], strides = [1, 1]} : vector<16x286xbf16> to vector<16x256xbf16>
    %c256_78 = arith.constant 256 : index
    %c0_79 = arith.constant 0 : index
    %121 = vector.load %arg11[%c256_78, %c0_79] : memref<496x256xbf16, #tpu.memory_space<vmem>>, vector<16x256xbf16>
    tpu.vector_store %arg11[%c256_78, %c0_79], %120 {strides = array<i32>} : memref<496x256xbf16, #tpu.memory_space<vmem>>, vector<16x256xbf16>,
    %122 = vector.extract_strided_slice %87 {offsets = [0, 17], sizes = [16, 256], strides = [1, 1]} : vector<16x286xbf16> to vector<16x256xbf16>
    %c272_80 = arith.constant 272 : index
    %c0_81 = arith.constant 0 : index
    %123 = vector.load %arg11[%c272_80, %c0_81] : memref<496x256xbf16, #tpu.memory_space<vmem>>, vector<16x256xbf16>
    tpu.vector_store %arg11[%c272_80, %c0_81], %122 {strides = array<i32>} : memref<496x256xbf16, #tpu.memory_space<vmem>>, vector<16x256xbf16>,
    %124 = vector.extract_strided_slice %87 {offsets = [0, 18], sizes = [16, 256], strides = [1, 1]} : vector<16x286xbf16> to vector<16x256xbf16>
    %c288_82 = arith.constant 288 : index
    %c0_83 = arith.constant 0 : index
    %125 = vector.load %arg11[%c288_82, %c0_83] : memref<496x256xbf16, #tpu.memory_space<vmem>>, vector<16x256xbf16>
    tpu.vector_store %arg11[%c288_82, %c0_83], %124 {strides = array<i32>} : memref<496x256xbf16, #tpu.memory_space<vmem>>, vector<16x256xbf16>,
    %126 = vector.extract_strided_slice %87 {offsets = [0, 19], sizes = [16, 256], strides = [1, 1]} : vector<16x286xbf16> to vector<16x256xbf16>
    %c304_84 = arith.constant 304 : index
    %c0_85 = arith.constant 0 : index
    %127 = vector.load %arg11[%c304_84, %c0_85] : memref<496x256xbf16, #tpu.memory_space<vmem>>, vector<16x256xbf16>
    tpu.vector_store %arg11[%c304_84, %c0_85], %126 {strides = array<i32>} : memref<496x256xbf16, #tpu.memory_space<vmem>>, vector<16x256xbf16>,
    %128 = vector.extract_strided_slice %87 {offsets = [0, 20], sizes = [16, 256], strides = [1, 1]} : vector<16x286xbf16> to vector<16x256xbf16>
    %c320_86 = arith.constant 320 : index
    %c0_87 = arith.constant 0 : index
    %129 = vector.load %arg11[%c320_86, %c0_87] : memref<496x256xbf16, #tpu.memory_space<vmem>>, vector<16x256xbf16>
    tpu.vector_store %arg11[%c320_86, %c0_87], %128 {strides = array<i32>} : memref<496x256xbf16, #tpu.memory_space<vmem>>, vector<16x256xbf16>,
    %130 = vector.extract_strided_slice %87 {offsets = [0, 21], sizes = [16, 256], strides = [1, 1]} : vector<16x286xbf16> to vector<16x256xbf16>
    %c336_88 = arith.constant 336 : index
    %c0_89 = arith.constant 0 : index
    %131 = vector.load %arg11[%c336_88, %c0_89] : memref<496x256xbf16, #tpu.memory_space<vmem>>, vector<16x256xbf16>
    tpu.vector_store %arg11[%c336_88, %c0_89], %130 {strides = array<i32>} : memref<496x256xbf16, #tpu.memory_space<vmem>>, vector<16x256xbf16>,
    %132 = vector.extract_strided_slice %87 {offsets = [0, 22], sizes = [16, 256], strides = [1, 1]} : vector<16x286xbf16> to vector<16x256xbf16>
    %c352_90 = arith.constant 352 : index
    %c0_91 = arith.constant 0 : index
    %133 = vector.load %arg11[%c352_90, %c0_91] : memref<496x256xbf16, #tpu.memory_space<vmem>>, vector<16x256xbf16>
    tpu.vector_store %arg11[%c352_90, %c0_91], %132 {strides = array<i32>} : memref<496x256xbf16, #tpu.memory_space<vmem>>, vector<16x256xbf16>,
    %134 = vector.extract_strided_slice %87 {offsets = [0, 23], sizes = [16, 256], strides = [1, 1]} : vector<16x286xbf16> to vector<16x256xbf16>
    %c368_92 = arith.constant 368 : index
    %c0_93 = arith.constant 0 : index
    %135 = vector.load %arg11[%c368_92, %c0_93] : memref<496x256xbf16, #tpu.memory_space<vmem>>, vector<16x256xbf16>
    tpu.vector_store %arg11[%c368_92, %c0_93], %134 {strides = array<i32>} : memref<496x256xbf16, #tpu.memory_space<vmem>>, vector<16x256xbf16>,
    %136 = vector.extract_strided_slice %87 {offsets = [0, 24], sizes = [16, 256], strides = [1, 1]} : vector<16x286xbf16> to vector<16x256xbf16>
    %c384_94 = arith.constant 384 : index
    %c0_95 = arith.constant 0 : index
    %137 = vector.load %arg11[%c384_94, %c0_95] : memref<496x256xbf16, #tpu.memory_space<vmem>>, vector<16x256xbf16>
    tpu.vector_store %arg11[%c384_94, %c0_95], %136 {strides = array<i32>} : memref<496x256xbf16, #tpu.memory_space<vmem>>, vector<16x256xbf16>,
    %138 = vector.extract_strided_slice %87 {offsets = [0, 25], sizes = [16, 256], strides = [1, 1]} : vector<16x286xbf16> to vector<16x256xbf16>
    %c400_96 = arith.constant 400 : index
    %c0_97 = arith.constant 0 : index
    %139 = vector.load %arg11[%c400_96, %c0_97] : memref<496x256xbf16, #tpu.memory_space<vmem>>, vector<16x256xbf16>
    tpu.vector_store %arg11[%c400_96, %c0_97], %138 {strides = array<i32>} : memref<496x256xbf16, #tpu.memory_space<vmem>>, vector<16x256xbf16>,
    %140 = vector.extract_strided_slice %87 {offsets = [0, 26], sizes = [16, 256], strides = [1, 1]} : vector<16x286xbf16> to vector<16x256xbf16>
    %c416_98 = arith.constant 416 : index
    %c0_99 = arith.constant 0 : index
    %141 = vector.load %arg11[%c416_98, %c0_99] : memref<496x256xbf16, #tpu.memory_space<vmem>>, vector<16x256xbf16>
    tpu.vector_store %arg11[%c416_98, %c0_99], %140 {strides = array<i32>} : memref<496x256xbf16, #tpu.memory_space<vmem>>, vector<16x256xbf16>,
    %142 = vector.extract_strided_slice %87 {offsets = [0, 27], sizes = [16, 256], strides = [1, 1]} : vector<16x286xbf16> to vector<16x256xbf16>
    %c432_100 = arith.constant 432 : index
    %c0_101 = arith.constant 0 : index
    %143 = vector.load %arg11[%c432_100, %c0_101] : memref<496x256xbf16, #tpu.memory_space<vmem>>, vector<16x256xbf16>
    tpu.vector_store %arg11[%c432_100, %c0_101], %142 {strides = array<i32>} : memref<496x256xbf16, #tpu.memory_space<vmem>>, vector<16x256xbf16>,
    %144 = vector.extract_strided_slice %87 {offsets = [0, 28], sizes = [16, 256], strides = [1, 1]} : vector<16x286xbf16> to vector<16x256xbf16>
    %c448_102 = arith.constant 448 : index
    %c0_103 = arith.constant 0 : index
    %145 = vector.load %arg11[%c448_102, %c0_103] : memref<496x256xbf16, #tpu.memory_space<vmem>>, vector<16x256xbf16>
    tpu.vector_store %arg11[%c448_102, %c0_103], %144 {strides = array<i32>} : memref<496x256xbf16, #tpu.memory_space<vmem>>, vector<16x256xbf16>,
    %146 = vector.extract_strided_slice %87 {offsets = [0, 29], sizes = [16, 256], strides = [1, 1]} : vector<16x286xbf16> to vector<16x256xbf16>
    %c464_104 = arith.constant 464 : index
    %c0_105 = arith.constant 0 : index
    %147 = vector.load %arg11[%c464_104, %c0_105] : memref<496x256xbf16, #tpu.memory_space<vmem>>, vector<16x256xbf16>
    tpu.vector_store %arg11[%c464_104, %c0_105], %146 {strides = array<i32>} : memref<496x256xbf16, #tpu.memory_space<vmem>>, vector<16x256xbf16>,
    %148 = vector.extract_strided_slice %87 {offsets = [0, 30], sizes = [16, 256], strides = [1, 1]} : vector<16x286xbf16> to vector<16x256xbf16>
    %c480_106 = arith.constant 480 : index
    %c0_107 = arith.constant 0 : index
    %149 = vector.load %arg11[%c480_106, %c0_107] : memref<496x256xbf16, #tpu.memory_space<vmem>>, vector<16x256xbf16>
    tpu.vector_store %arg11[%c480_106, %c0_107], %148 {strides = array<i32>} : memref<496x256xbf16, #tpu.memory_space<vmem>>, vector<16x256xbf16>,
    %c0_108 = arith.constant 0 : index
    %c0_109 = arith.constant 0 : index
    %150 = vector.load %arg4[%c0_108, %c0_109] : memref<16x496xbf16, #tpu.memory_space<vmem>>, vector<16x496xbf16>
    %c0_110 = arith.constant 0 : index
    %c0_111 = arith.constant 0 : index
    %151 = vector.load %arg11[%c0_110, %c0_111] : memref<496x256xbf16, #tpu.memory_space<vmem>>, vector<496x256xbf16>
    %cst_112 = arith.constant dense<0.000000e+00> : vector<16x256xf32>
    %152 = tpu.matmul %150, %151, %cst_112 {dimension_numbers = #tpu.dot_dimension_numbers<[1], [0], [0], [1], [0, 0, 1, 1], [], []>} : vector<16x496xbf16>, vector<496x256xbf16>, vector<16x256xf32> -> vector<16x256xf32>
    %c0_113 = arith.constant 0 : index
    %c0_114 = arith.constant 0 : index
    %153 = vector.load %arg7[%c0_113, %c0_114] : memref<16x1xf32, #tpu.memory_space<vmem>>, vector<16x1xf32>
    %154 = vector.broadcast %153 : vector<16x1xf32> to vector<16x256xf32>
    %155 = arith.mulf %152, %154 : vector<16x256xf32>
    %c0_115 = arith.constant 0 : index
    %c0_116 = arith.constant 0 : index
    %156 = vector.load %arg8[%c0_115, %c0_116] : memref<16x1xf32, #tpu.memory_space<vmem>>, vector<16x1xf32>
    %157 = vector.broadcast %156 : vector<16x1xf32> to vector<16x256xf32>
    %158 = arith.addf %155, %157 : vector<16x256xf32>
    %cst_117 = arith.constant 0.000000e+00 : f32
    %159 = vector.broadcast %cst_117 : f32 to vector<16x256xf32>
    %160 = arith.maximumf %158, %159 : vector<16x256xf32>
    %c0_118 = arith.constant 0 : index
    %c0_119 = arith.constant 0 : index
    %c0_120 = arith.constant 0 : index
    %161 = vector.load %arg9[%c0_118, %c0_119, %c0_120] : memref<1x16x256xf32, #tpu.memory_space<vmem>>, vector<1x16x256xf32>
    %162 = vector.shape_cast %161 : vector<1x16x256xf32> to vector<16x256xf32>
    %163 = vector.shape_cast %160 : vector<16x256xf32> to vector<1x16x256xf32>
    tpu.vector_store %arg9[%c0_118, %c0_119, %c0_120], %163 {strides = array<i32>} : memref<1x16x256xf32, #tpu.memory_space<vmem>>, vector<1x16x256xf32>,
    return
  }
  func.func @transform_0(%arg0: i32, %arg1: i32) -> (i32, i32, i32, i32) {
    %c0_i32 = arith.constant 0 : i32
    %c0_i32_0 = arith.constant 0 : i32
    %c0_i32_1 = arith.constant 0 : i32
    return %arg0, %arg1, %c0_i32, %c0_i32_0 : i32, i32, i32, i32
  }
  func.func @transform_1(%arg0: i32, %arg1: i32) -> (i32, i32) {
    %c0_i32 = arith.constant 0 : i32
    %c0_i32_0 = arith.constant 0 : i32
    %c0_i32_1 = arith.constant 0 : i32
    return %c0_i32, %c0_i32_0 : i32, i32
  }
  func.func @transform_2(%arg0: i32, %arg1: i32) -> (i32, i32) {
    %c0_i32 = arith.constant 0 : i32
    %c0_i32_0 = arith.constant 0 : i32
    %c0_i32_1 = arith.constant 0 : i32
    return %c0_i32, %c0_i32_0 : i32, i32
  }
  func.func @transform_3(%arg0: i32, %arg1: i32) -> (i32, i32) {
    %c0_i32 = arith.constant 0 : i32
    %c0_i32_0 = arith.constant 0 : i32
    %c0_i32_1 = arith.constant 0 : i32
    return %c0_i32, %c0_i32_0 : i32, i32
  }
  func.func @transform_4(%arg0: i32, %arg1: i32) -> (i32, i32) {
    %c0_i32 = arith.constant 0 : i32
    %c0_i32_0 = arith.constant 0 : i32
    %c0_i32_1 = arith.constant 0 : i32
    return %c0_i32, %c0_i32_0 : i32, i32
  }
  func.func @transform_5(%arg0: i32, %arg1: i32) -> (i32, i32) {
    %c0_i32 = arith.constant 0 : i32
    %c0_i32_0 = arith.constant 0 : i32
    %c0_i32_1 = arith.constant 0 : i32
    return %c0_i32, %c0_i32_0 : i32, i32
  }
  func.func @transform_6(%arg0: i32, %arg1: i32) -> (i32, i32) {
    %c0_i32 = arith.constant 0 : i32
    %c0_i32_0 = arith.constant 0 : i32
    %c0_i32_1 = arith.constant 0 : i32
    return %c0_i32, %c0_i32_0 : i32, i32
  }
  func.func @transform_7(%arg0: i32, %arg1: i32) -> (i32, i32, i32) {
    %c0_i32 = arith.constant 0 : i32
    %c0_i32_0 = arith.constant 0 : i32
    return %arg0, %c0_i32, %arg1 : i32, i32, i32
  }
}

</mosaic_0001>

<bundles_post_ra>
// kernel: double_conv_forward.1
= control target key start
LH: loop header
LB: loop body
LE: loop exit
PB: predicated region body
PF: predicated region fallthrough
CT: control target
= control target key end

     0   :  { %s2997_s0 = inlined_call_operand.vmem [shape: bf16[2,1,16,316], index: 0, kind: input, shape index: {}]   ;;  %s2998_s1 = inlined_call_operand.vmem [shape: bf16[16,496], index: 1, kind: input, shape index: {}]   ;;  %s2999_s2 = inlined_call_operand.vmem [shape: bf16[16,496], index: 2, kind: input, shape index: {}]   ;;  %s3000_s3 = inlined_call_operand.vmem [shape: f32[16,1], index: 3, kind: input, shape index: {}]   ;;  %s3001_s4 = inlined_call_operand.vmem [shape: f32[16,1], index: 4, kind: input, shape index: {}]   ;;  %s3002_s5 = inlined_call_operand.vmem [shape: f32[16,1], index: 5, kind: input, shape index: {}]   ;;  %s3003_s6 = inlined_call_operand.vmem [shape: f32[16,1], index: 6, kind: input, shape index: {}]   ;;  %s3004_s7 = inlined_call_operand.hbm [shape: f32[2,16,256], index: 7, kind: output, shape index: {}]  }
   0x1   :  { %3074 = sst [smem:[#allocation7_spill]] %s2997_s0 }
   0x2   :  { %3075 = sst [smem:[#allocation8_spill]] %s2998_s1 }
   0x3   :  { %3076 = sst [smem:[#allocation9_spill]] %s3000_s3 }
   0x4   :  { %12 = vsyncpa [#allocation5], 0 }
   0x5   :  { %14 = vsyncpa [#allocation5 + $0x1], 0  ;;  %s2137_s24 = smov 0   ;;  %s2139_s25 = smov 0  }
   0x6   :  { %s2141_s26 = smov 0   ;;  %s2143_s27 = smov 0  }
   0x7   :  { %s2145_s28 = smov 0   ;;  %s2147_s29 = smov 0  }
   0x8 LB: > { %s1816_s30 = sadd.s32 4294967295, %s2061_s29   ;;  %s1817_s8 = sadd.s32 4294967294, %s2061_s29   ;;  %s2061_s29 = sphi %s2147_s29, %s20_s29   ;;  %s2057_s28 = sphi %s2145_s28, %s3147_s28   ;;  %s2053_s27 = sphi %s2143_s27, %s3146_s27   ;;  %s2049_s26 = sphi %s2141_s26, %s3145_s26   ;;  %s2045_s25 = sphi %s2139_s25, %s3144_s25   ;;  %s2041_s24 = sphi %s2137_s24, %s3143_s24  }
   0x9   : > { %s32_s9 = sadd.s32 1, %s2057_s28  ;;  %s195_s10 = sadd.s32 1, %s2049_s26 }
   0xa   : > { %p34_p0 = scmp.ge.s32.totalorder %s32_s9, 2  ;;  %p205_p1 = scmp.ne.s32.totalorder %s2049_s26, %s2045_s25 }
   0xb   : > { %p206_p2 = scmp.eq.s32.totalorder %s1816_s30, 1  ;;  %p211_p3 = scmp.ne.s32.totalorder %s2045_s25, %s2041_s24 }
   0xc   : > { %s3149_s9 = smov (%p34_p0, %s32_s9), 0  ;;  %p212_p5 = scmp.eq.s32.totalorder %s1817_s8, 1 }
   0xd   : > { %p2177_p4 = por %p206_p2, %p205_p1  ;;  %s190_s12 = ssub.s32 %s2057_s28, %s3149_s9 }
   0xe   : > { %p1820_p6 = scmp.ge.s32.totalorder %s2061_s29, 1  ;;  %p193_p7 = scmp.eq.s32.totalorder %s190_s12, 0 }
   0xf   : > { %p2184_p8 = por %p212_p5, %p211_p3  ;;  %p260_p9 = scmp.lt.s32.totalorder %s2061_s29, 3 }
  0x10   : > { %s2190_s14 = scalar_select %p193_p7, %s2049_s26, %s195_s10  }
  0x11   : > { %p261_p10 = pnand %p1820_p6, %p260_p9 }
  0x12   : > { %p296_p11 = scmp.lt.s32.totalorder (!%p261_p10), %s2053_s27, 1  ;;  %s3079_s0 = sld [smem:[#allocation7_spill]] (!%p261_p10)  ;;  %vm329_vm0 = vcmask (!%p261_p10), 244736   ;;  %v2078_v4 = vmov (!%p261_p10), 0   ;;  %vm337_vm1 = vcmask (!%p261_p10), 1039360   ;;  %vm352_vm2 = vcmask (!%p261_p10), 1031168  }
  0x13   : > { %264 = sbr.rel (%p261_p10) target bundleno = 1084 (0x43c), region = 48  ;;  %s2063_s20 = smov (!%p261_p10), 127   ;;  %1028 = vmatprep.subr.bf16.mxu1 (!%p261_p10), %v2078_v4  ;;  %1966 = vset.pattern.permute.xlu1 (!%p261_p10), %v2078_v4  ;;  %vm367_vm3 = vcmask (!%p261_p10), 1022976   ;;  %vm382_vm4 = vcmask (!%p261_p10), 1014784   ;;  %vm397_vm5 = vcmask (!%p261_p10), 1006592   ;;  %vm412_vm6 = vcmask (!%p261_p10), 998400  }
  0x14   : > { %s2064_s21 = smov (!%p261_p10), 126   ;;  %s3073_s22 = smov (!%p261_p10), 125   ;;  %1965 = vset.pattern.permute.xlu0 (!%p261_p10), %v2078_v4  ;;  %vm427_vm7 = vcmask (!%p261_p10), 990208   ;;  %vm442_vm8 = vcmask (!%p261_p10), 982016   ;;  %vm457_vm9 = vcmask (!%p261_p10), 973824   ;;  %vm472_vm10 = vcmask (!%p261_p10), 965632  }
  0x15   : > { %s3072_s23 = smov (!%p261_p10), 124   ;;  %s3054_s30 = smov (!%p261_p10), 123   ;;  %vm3058_vm11 = vcmask (!%p261_p10), 916480   ;;  %vm487_vm12 = vcmask (!%p261_p10), 957440   ;;  %vm3041_vm13 = vcmask (!%p261_p10), 949248   ;;  %vm517_vm14 = vcmask (!%p261_p10), 941056  }
  0x16   : > { %s3071_s8 = smov (!%p261_p10), 122   ;;  %s3050_s10 = smov (!%p261_p10), 121   ;;  %vm3057_vm15 = vcmask (!%p261_p10), 932864  }
  0x17   : > { %s3052_s12 = smov (!%p261_p10), 120   ;;  %s3005_s17 = smov (!%p261_p10), 117  }
  0x18   : > { %s3011_s18 = smov (!%p261_p10), 116   ;;  %s3080_s1 = sld [smem:[#allocation8_spill]] (!%p261_p10) }
  0x19   : > { %s3081_s3 = sld [smem:[#allocation9_spill]] (!%p261_p10) }
  0x1a   : > { %s297_s15 = scalar_select %p296_p11, %s2053_s27, 1 }
  0x1c   : > { %s1876_s16 = smul.u32 24, %s297_s15  ;;  %s3007_s15 = smov 119  }
  0x1e   : > { %s304_s19 = scalar_lea.vmem %s3079_s0, %s1876_s16  ;;  %s3009_s16 = smov 118   ;;  %v2290_v3 = vld [vmem:[%s3080_s1 + $0x4] ss:$16 sps:$4 sm:$0xff]   ;;  %v2414_v51 = vld [vmem:[%s3080_s1 + $0xc] ss:$16 sps:$4 sm:$0xff]  }
  0x1f   : > { %v2197_v0 = vld [vmem:[%s304_s19 + $0x4] ss:$12 sps:$4 sm:$0xff]   ;;  %v2199_v1 = vld [vmem:[%s304_s19] ss:$12 sps:$4 sm:$0xff]   ;;  %v2203_v2 = vld [vmem:[%s304_s19 + $0x8] ss:$12 sps:$4 sm:$0xff]   ;;  %933 = vmatprep.mubr.bf16.mxu0 %v2290_v3  ;;  %1831 = vmatprep.mubr.msk.bf16.mxu1 %vm3058_vm11, %v2414_v51 }
  0x20   : > { %333 = vrot.lane.b32.xlu0 %v2197_v0, %s2063_s20  ;;  %901 = vmatprep.subr.bf16.mxu0 %v2197_v0  ;;  %330 = vst.msk [vmem:[#allocation2 + $0x10] sm:$0xff] %vm329_vm0, %v2203_v2  ;;  %s3039_s19 = smov 115   ;;  %s3093_s0 = smov 125  }
  0x21   : > { %331 = vrot.lane.b32.xlu1 %v2199_v1, %s2063_s20  ;;  %902 = vmatpush1.bf16.msra.mxu0 %v2199_v1 }
  0x24   : > { %335 = vrot.lane.b32.xlu0 %v2203_v2, %s2063_s20 }
  0x25   : > { %348 = vrot.lane.b32.xlu1 %v2197_v0, %s2064_s21 }
  0x28   : > { %350 = vrot.lane.b32.xlu0 %v2203_v2, %s2064_s21 }
  0x29   : > { %346 = vrot.lane.b32.xlu1 %v2199_v1, %s2064_s21 }
  0x2c   : > { %363 = vrot.lane.b32.xlu0 %v2197_v0, %s3073_s22 }
  0x2d   : > { %365 = vrot.lane.b32.xlu1 %v2203_v2, %s3073_s22 }
  0x30   : > { %361 = vrot.lane.b32.xlu0 %v2199_v1, %s3073_s22 }
  0x31   : > { %378 = vrot.lane.b32.xlu1 %v2197_v0, %s3072_s23 }
  0x34   : > { %380 = vrot.lane.b32.xlu0 %v2203_v2, %s3072_s23 }
  0x35   : > { %376 = vrot.lane.b32.xlu1 %v2199_v1, %s3072_s23 }
  0x38   : > { %393 = vrot.lane.b32.xlu0 %v2197_v0, %s3054_s30 }
  0x39   : > { %395 = vrot.lane.b32.xlu1 %v2203_v2, %s3054_s30 }
  0x3c   : > { %391 = vrot.lane.b32.xlu0 %v2199_v1, %s3054_s30  ;;  %s3088_s30 = smov 117  }
  0x3d   : > { %408 = vrot.lane.b32.xlu1 %v2197_v0, %s3071_s8 }
  0x40   : > { %410 = vrot.lane.b32.xlu0 %v2203_v2, %s3071_s8 }
  0x41   : > { %406 = vrot.lane.b32.xlu1 %v2199_v1, %s3071_s8 }
  0x44   : > { %423 = vrot.lane.b32.xlu0 %v2197_v0, %s3050_s10 }
  0x45   : > { %425 = vrot.lane.b32.xlu1 %v2203_v2, %s3050_s10 }
  0x48   : > { %421 = vrot.lane.b32.xlu0 %v2199_v1, %s3050_s10  ;;  %s3089_s10 = smov 114  }
  0x49   : > { %438 = vrot.lane.b32.xlu1 %v2197_v0, %s3052_s12 }
  0x4c   : > { %440 = vrot.lane.b32.xlu0 %v2203_v2, %s3052_s12 }
  0x4d   : > { %436 = vrot.lane.b32.xlu1 %v2199_v1, %s3052_s12  ;;  %s3082_s12 = smov 123  }
  0x50   : > { %453 = vrot.lane.b32.xlu0 %v2197_v0, %s3007_s15 }
  0x51   : > { %455 = vrot.lane.b32.xlu1 %v2203_v2, %s3007_s15 }
  0x54   : > { %451 = vrot.lane.b32.xlu0 %v2199_v1, %s3007_s15  ;;  %s3015_s15 = smov 112  }
  0x55   : > { %468 = vrot.lane.b32.xlu1 %v2197_v0, %s3009_s16 }
  0x58   : > { %470 = vrot.lane.b32.xlu0 %v2203_v2, %s3009_s16 }
  0x59   : > { %466 = vrot.lane.b32.xlu1 %v2199_v1, %s3009_s16  ;;  %s3017_s16 = smov 111  }
  0x5c   : > { %483 = vrot.lane.b32.xlu0 %v2197_v0, %s3005_s17 }
  0x5d   : > { %485 = vrot.lane.b32.xlu1 %v2203_v2, %s3005_s17 }
  0x60   : > { %481 = vrot.lane.b32.xlu0 %v2199_v1, %s3005_s17  ;;  %s3048_s17 = smov 114  }
  0x61   : > { %498 = vrot.lane.b32.xlu1 %v2197_v0, %s3011_s18 }
  0x64   : > { %500 = vrot.lane.b32.xlu0 %v2203_v2, %s3011_s18 }
  0x65   : > { %496 = vrot.lane.b32.xlu1 %v2199_v1, %s3011_s18  ;;  %s3013_s18 = smov 113  }
  0x68   : > { %513 = vrot.lane.b32.xlu0 %v2197_v0, %s3039_s19 }
  0x69   : > { %515 = vrot.lane.b32.xlu1 %v2203_v2, %s3039_s19 }
  0x6c   : > { %511 = vrot.lane.b32.xlu0 %v2199_v1, %s3039_s19  ;;  %s3044_s19 = smov 99  }
  0x6d   : > { %528 = vrot.lane.b32.xlu1 %v2197_v0, %s3048_s17 }
  0x70   : > { %530 = vrot.lane.b32.xlu0 %v2203_v2, %s3048_s17 }
  0x71   : > { %526 = vrot.lane.b32.xlu1 %v2199_v1, %s3048_s17  ;;  %s3083_s17 = smov 120  }
  0x74   : > { %543 = vrot.lane.b32.xlu0 %v2197_v0, %s3013_s18 }
  0x75   : > { %545 = vrot.lane.b32.xlu1 %v2203_v2, %s3013_s18 }
  0x78   : > { %541 = vrot.lane.b32.xlu0 %v2199_v1, %s3013_s18  ;;  %s3037_s18 = smov 110  }
  0x79   : > { %558 = vrot.lane.b32.xlu1 %v2197_v0, %s3015_s15 }
  0x7c   : > { %560 = vrot.lane.b32.xlu0 %v2203_v2, %s3015_s15 }
  0x7d   : > { %556 = vrot.lane.b32.xlu1 %v2199_v1, %s3015_s15  ;;  %s3019_s15 = smov 109  }
  0x80   : > { %573 = vrot.lane.b32.xlu0 %v2197_v0, %s3017_s16 }
  0x81   : > { %575 = vrot.lane.b32.xlu1 %v2203_v2, %s3017_s16 }
  0x84   : > { %571 = vrot.lane.b32.xlu0 %v2199_v1, %s3017_s16  ;;  %s3021_s16 = smov 108  }
  0x85   : > { %588 = vrot.lane.b32.xlu1 %v2197_v0, %s3037_s18 }
  0x88   : > { %590 = vrot.lane.b32.xlu0 %v2203_v2, %s3037_s18 }
  0x89   : > { %586 = vrot.lane.b32.xlu1 %v2199_v1, %s3037_s18  ;;  %s3042_s18 = smov 98  }
  0x8c   : > { %603 = vrot.lane.b32.xlu0 %v2197_v0, %s3019_s15 }
  0x8d   : > { %605 = vrot.lane.b32.xlu1 %v2203_v2, %s3019_s15 }
  0x90   : > { %601 = vrot.lane.b32.xlu0 %v2199_v1, %s3019_s15  ;;  %s3023_s15 = smov 107  }
  0x91   : > { %618 = vrot.lane.b32.xlu1 %v2197_v0, %s3021_s16 }
  0x92   : > { %v334_v5 = vpop.permute.xlu0 %333 }
  0x93   : > { %v332_v6 = vpop.permute.xlu1 %331 }
  0x94   : > { %v338_v7 = vsel %vm337_vm1, %v332_v6, %v334_v5  ;;  %620 = vrot.lane.b32.xlu0 %v2203_v2, %s3021_s16 }
  0x95   : > { %616 = vrot.lane.b32.xlu1 %v2199_v1, %s3021_s16  ;;  %s3025_s16 = smov 106  }
  0x96   : > { %v336_v8 = vpop.permute.xlu0 %335 }
  0x97   : > { %v339_v9 = vsel %vm337_vm1, %v334_v5, %v336_v8  ;;  %345 = vst.msk [vmem:[#allocation2 + $0x28] sm:$0xff] %vm329_vm0, %v336_v8  ;;  %v349_v10 = vpop.permute.xlu1 %348 }
  0x98   : > { %633 = vrot.lane.b32.xlu0 %v2197_v0, %s3023_s15  ;;  %903 = vmatprep.subr.bf16.mxu0 %v339_v9 }
  0x99   : > { %635 = vrot.lane.b32.xlu1 %v2203_v2, %s3023_s15  ;;  %904 = vmatpush1.bf16.msra.mxu0 %v338_v7 }
  0x9a   : > { %v351_v11 = vpop.permute.xlu0 %350 }
  0x9b   : > { %v354_v12 = vsel %vm352_vm2, %v349_v10, %v351_v11  ;;  %360 = vst.msk [vmem:[#allocation2 + $0x40] sm:$0xff] %vm329_vm0, %v351_v11  ;;  %v347_v13 = vpop.permute.xlu1 %346 }
  0x9c   : > { %v353_v14 = vsel %vm352_vm2, %v347_v13, %v349_v10  ;;  %631 = vrot.lane.b32.xlu0 %v2199_v1, %s3023_s15  ;;  %905 = vmatprep.subr.bf16.mxu0 %v354_v12  ;;  %s3027_s15 = smov 105  }
  0x9d   : > { %648 = vrot.lane.b32.xlu1 %v2197_v0, %s3025_s16  ;;  %906 = vmatpush1.bf16.msra.mxu0 %v353_v14 }
  0x9e   : > { %v364_v15 = vpop.permute.xlu0 %363 }
  0x9f   : > { %v366_v16 = vpop.permute.xlu1 %365 }
  0xa0   : > { %v369_v17 = vsel %vm367_vm3, %v364_v15, %v366_v16  ;;  %375 = vst.msk [vmem:[#allocation2 + $0x58] sm:$0xff] %vm329_vm0, %v366_v16  ;;  %650 = vrot.lane.b32.xlu0 %v2203_v2, %s3025_s16 }
  0xa1   : > { %646 = vrot.lane.b32.xlu1 %v2199_v1, %s3025_s16  ;;  %907 = vmatprep.subr.bf16.mxu0 %v369_v17  ;;  %s3029_s16 = smov 104   ;;  %v1069_v17 = vld [vmem:[%s3081_s3] sm:$0xff] }
  0xa2   : > { %v362_v18 = vpop.permute.xlu0 %361 }
  0xa3   : > { %v368_v19 = vsel %vm367_vm3, %v362_v18, %v364_v15  ;;  %v379_v20 = vpop.permute.xlu1 %378  ;;  %v1070_v18 = vld [vmem:[%s3081_s3 + $0x8] sm:$0xff]  ;;  %s3095_s3 = smov 124  }
  0xa4   : > { %663 = vrot.lane.b32.xlu0 %v2197_v0, %s3027_s15  ;;  %908 = vmatpush1.bf16.msra.mxu0 %v368_v19 }
  0xa5   : > { %665 = vrot.lane.b32.xlu1 %v2203_v2, %s3027_s15 }
  0xa6   : > { %v381_v21 = vpop.permute.xlu0 %380 }
  0xa7   : > { %v384_v22 = vsel %vm382_vm4, %v379_v20, %v381_v21  ;;  %390 = vst.msk [vmem:[#allocation2 + $0x70] sm:$0xff] %vm329_vm0, %v381_v21  ;;  %v377_v23 = vpop.permute.xlu1 %376 }
  0xa8   : > { %v383_v24 = vsel %vm382_vm4, %v377_v23, %v379_v20  ;;  %661 = vrot.lane.b32.xlu0 %v2199_v1, %s3027_s15  ;;  %909 = vmatprep.subr.bf16.mxu0 %v384_v22  ;;  %s3031_s15 = smov 103   ;;  %v1088_v20 = vld [vmem:[%s3001_s4 + $0x8] sm:$0xff]  ;;  %v2460_v23 = vld [vmem:[%s3080_s1] ss:$16 sps:$4 sm:$0xff]  }
  0xa9   : > { %678 = vrot.lane.b32.xlu1 %v2197_v0, %s3029_s16  ;;  %910 = vmatpush1.bf16.msra.mxu0 %v383_v24  ;;  %v1087_v24 = vld [vmem:[%s3001_s4] sm:$0xff] }
  0xaa   : > { %v394_v25 = vpop.permute.xlu0 %393 }
  0xab   : > { %v396_v26 = vpop.permute.xlu1 %395 }
  0xac   : > { %v399_v27 = vsel %vm397_vm5, %v394_v25, %v396_v26  ;;  %405 = vst.msk [vmem:[#allocation2 + $0x88] sm:$0xff] %vm329_vm0, %v396_v26  ;;  %680 = vrot.lane.b32.xlu0 %v2203_v2, %s3029_s16 }
  0xad   : > { %676 = vrot.lane.b32.xlu1 %v2199_v1, %s3029_s16  ;;  %911 = vmatprep.subr.bf16.mxu0 %v399_v27  ;;  %s3033_s16 = smov 102  }
  0xae   : > { %v392_v28 = vpop.permute.xlu0 %391 }
  0xaf   : > { %v398_v29 = vsel %vm397_vm5, %v392_v28, %v394_v25  ;;  %v409_v30 = vpop.permute.xlu1 %408 }
  0xb0   : > { %693 = vrot.lane.b32.xlu0 %v2197_v0, %s3031_s15  ;;  %912 = vmatpush1.bf16.msra.mxu0 %v398_v29 }
  0xb1   : > { %695 = vrot.lane.b32.xlu1 %v2203_v2, %s3031_s15 }
  0xb2   : > { %v411_v31 = vpop.permute.xlu0 %410 }
  0xb3   : > { %v414_v32 = vsel %vm412_vm6, %v409_v30, %v411_v31  ;;  %420 = vst.msk [vmem:[#allocation2 + $0xa0] sm:$0xff] %vm329_vm0, %v411_v31  ;;  %v407_v33 = vpop.permute.xlu1 %406 }
  0xb4   : > { %v413_v34 = vsel %vm412_vm6, %v407_v33, %v409_v30  ;;  %691 = vrot.lane.b32.xlu0 %v2199_v1, %s3031_s15  ;;  %913 = vmatprep.subr.bf16.mxu0 %v414_v32  ;;  %s3035_s15 = smov 101  }
  0xb5   : > { %708 = vrot.lane.b32.xlu1 %v2197_v0, %s3033_s16  ;;  %914 = vmatpush1.bf16.msra.mxu0 %v413_v34 }
  0xb6   : > { %v424_v35 = vpop.permute.xlu0 %423 }
  0xb7   : > { %v426_v36 = vpop.permute.xlu1 %425 }
  0xb8   : > { %v429_v37 = vsel %vm427_vm7, %v424_v35, %v426_v36  ;;  %435 = vst.msk [vmem:[#allocation2 + $0xb8] sm:$0xff] %vm329_vm0, %v426_v36  ;;  %710 = vrot.lane.b32.xlu0 %v2203_v2, %s3033_s16 }
  0xb9   : > { %706 = vrot.lane.b32.xlu1 %v2199_v1, %s3033_s16  ;;  %915 = vmatprep.subr.bf16.mxu0 %v429_v37  ;;  %s3046_s16 = smov 100  }
  0xba   : > { %v422_v38 = vpop.permute.xlu0 %421 }
  0xbb   : > { %v428_v39 = vsel %vm427_vm7, %v422_v38, %v424_v35  ;;  %v439_v40 = vpop.permute.xlu1 %438 }
  0xbc   : > { %723 = vrot.lane.b32.xlu0 %v2197_v0, %s3035_s15  ;;  %916 = vmatpush1.bf16.msra.mxu0 %v428_v39 }
  0xbd   : > { %725 = vrot.lane.b32.xlu1 %v2203_v2, %s3035_s15 }
  0xbe   : > { %v441_v41 = vpop.permute.xlu0 %440 }
  0xbf   : > { %v444_v42 = vsel %vm442_vm8, %v439_v40, %v441_v41  ;;  %450 = vst.msk [vmem:[#allocation2 + $0xd0] sm:$0xff] %vm329_vm0, %v441_v41  ;;  %v437_v43 = vpop.permute.xlu1 %436 }
  0xc0   : > { %v443_v44 = vsel %vm442_vm8, %v437_v43, %v439_v40  ;;  %721 = vrot.lane.b32.xlu0 %v2199_v1, %s3035_s15  ;;  %917 = vmatprep.subr.bf16.mxu0 %v444_v42  ;;  %s3087_s15 = smov 116  }
  0xc1   : > { %738 = vrot.lane.b32.xlu1 %v2197_v0, %s3046_s16  ;;  %918 = vmatpush1.bf16.msra.mxu0 %v443_v44 }
  0xc2   : > { %v454_v45 = vpop.permute.xlu0 %453 }
  0xc3   : > { %v456_v46 = vpop.permute.xlu1 %455 }
  0xc4   : > { %v459_v47 = vsel %vm457_vm9, %v454_v45, %v456_v46  ;;  %465 = vst.msk [vmem:[#allocation2 + $0xe8] sm:$0xff] %vm329_vm0, %v456_v46  ;;  %740 = vrot.lane.b32.xlu0 %v2203_v2, %s3046_s16 }
  0xc5   : > { %736 = vrot.lane.b32.xlu1 %v2199_v1, %s3046_s16  ;;  %919 = vmatprep.subr.bf16.mxu0 %v459_v47  ;;  %s3085_s16 = smov 118  }
  0xc6   : > { %v452_v48 = vpop.permute.xlu0 %451 }
  0xc7   : > { %v458_v49 = vsel %vm457_vm9, %v452_v48, %v454_v45  ;;  %v469_v50 = vpop.permute.xlu1 %468 }
  0xc8   : > { %753 = vrot.lane.b32.xlu0 %v2197_v0, %s3044_s19  ;;  %920 = vmatpush1.bf16.msra.mxu0 %v458_v49 }
  0xc9   : > { %755 = vrot.lane.b32.xlu1 %v2203_v2, %s3044_s19 }
  0xca   : > { %v471_v52 = vpop.permute.xlu0 %470 }
  0xcb   : > { %v474_v53 = vsel %vm472_vm10, %v469_v50, %v471_v52  ;;  %480 = vst.msk [vmem:[#allocation2 + $0x100] sm:$0xff] %vm329_vm0, %v471_v52  ;;  %v467_v54 = vpop.permute.xlu1 %466 }
  0xcc   : > { %v473_v55 = vsel %vm472_vm10, %v467_v54, %v469_v50  ;;  %751 = vrot.lane.b32.xlu0 %v2199_v1, %s3044_s19  ;;  %921 = vmatprep.subr.bf16.mxu0 %v474_v53  ;;  %s3084_s19 = smov 121  }
  0xcd   : > { %768 = vrot.lane.b32.xlu1 %v2197_v0, %s3042_s18  ;;  %922 = vmatpush1.bf16.msra.mxu0 %v473_v55 }
  0xce   : > { %v484_v56 = vpop.permute.xlu0 %483 }
  0xcf   : > { %v486_v57 = vpop.permute.xlu1 %485 }
  0xd0   : > { %v489_v58 = vsel %vm487_vm12, %v484_v56, %v486_v57  ;;  %495 = vst.msk [vmem:[#allocation2 + $0x118] sm:$0xff] %vm329_vm0, %v486_v57  ;;  %770 = vrot.lane.b32.xlu0 %v2203_v2, %s3042_s18 }
  0xd1   : > { %766 = vrot.lane.b32.xlu1 %v2199_v1, %s3042_s18  ;;  %923 = vmatprep.subr.bf16.mxu0 %v489_v58  ;;  %s3086_s18 = smov 119  }
  0xd2   : > { %v482_v59 = vpop.permute.xlu0 %481 }
  0xd3   : > { %v488_v60 = vsel %vm487_vm12, %v482_v59, %v484_v56  ;;  %v499_v61 = vpop.permute.xlu1 %498 }
  0xd4   : > { %924 = vmatpush1.bf16.msra.mxu0 %v488_v60  ;;  %1073 = vperm.xlu0 %1965, %v1069_v17  }
  0xd5   : > { %1078 = vperm.xlu1 %1966, %v1070_v18  }
  0xd6   : > { %v501_v62 = vpop.permute.xlu0 %500 }
  0xd7   : > { %v504_v63 = vsel %vm3041_vm13, %v499_v61, %v501_v62  ;;  %510 = vst.msk [vmem:[#allocation2 + $0x130] sm:$0xff] %vm329_vm0, %v501_v62  ;;  %v497_v0 = vpop.permute.xlu1 %496 }
  0xd8   : > { %v503_v5 = vsel %vm3041_vm13, %v497_v0, %v499_v61  ;;  %925 = vmatprep.subr.bf16.mxu0 %v504_v63  ;;  %vm3056_vm13 = vcmask 924672   ;;  %1096 = vperm.xlu0 %1965, %v1088_v20  }
  0xd9   : > { %926 = vmatpush1.bf16.msra.mxu0 %v503_v5  ;;  %1091 = vperm.xlu1 %1966, %v1087_v24  }
  0xda   : > { %v514_v2 = vpop.permute.xlu0 %513 }
  0xdb   : > { %v516_v1 = vpop.permute.xlu1 %515 }
  0xdc   : > { %v519_v6 = vsel %vm517_vm14, %v514_v2, %v516_v1  ;;  %525 = vst.msk [vmem:[#allocation2 + $0x148] sm:$0xff] %vm329_vm0, %v516_v1 }
  0xdd   : > { %927 = vmatprep.subr.bf16.mxu0 %v519_v6 }
  0xde   : > { %v512_v7 = vpop.permute.xlu0 %511 }
  0xdf   : > { %v518_v8 = vsel %vm517_vm14, %v512_v7, %v514_v2  ;;  %v529_v9 = vpop.permute.xlu1 %528 }
  0xe0   : > { %928 = vmatpush1.bf16.msra.mxu0 %v518_v8 }
  0xe2   : > { %v531_v10 = vpop.permute.xlu0 %530 }
  0xe3   : > { %v534_v11 = vsel %vm3057_vm15, %v529_v9, %v531_v10  ;;  %540 = vst.msk [vmem:[#allocation2 + $0x160] sm:$0xff] %vm329_vm0, %v531_v10  ;;  %v527_v12 = vpop.permute.xlu1 %526 }
  0xe4   : > { %v533_v13 = vsel %vm3057_vm15, %v527_v12, %v529_v9  ;;  %929 = vmatprep.subr.bf16.mxu0 %v534_v11  ;;  %vm3059_vm15 = vcmask 900096  }
  0xe5   : > { %930 = vmatpush1.bf16.msra.mxu0 %v533_v13 }
  0xe6   : > { %v544_v14 = vpop.permute.xlu0 %543 }
  0xe7   : > { %v546_v15 = vpop.permute.xlu1 %545 }
  0xe8   : > { %v549_v16 = vsel %vm3056_vm13, %v544_v14, %v546_v15  ;;  %555 = vst.msk [vmem:[#allocation2 + $0x178] sm:$0xff] %vm329_vm0, %v546_v15 }
  0xe9   : > { %931 = vmatprep.subr.bf16.mxu0 %v549_v16 }
  0xea   : > { %v542_v19 = vpop.permute.xlu0 %541 }
  0xeb   : > { %v548_v21 = vsel %vm3056_vm13, %v542_v19, %v544_v14  ;;  %v559_v22 = vpop.permute.xlu1 %558  ;;  %vm3060_vm13 = vcmask 908288  }
  0xec   : > { %932 = vmatpush1.bf16.msra.mxu0 %v548_v21 }
  0xee   : > { %v561_v25 = vpop.permute.xlu0 %560 }
  0xef   : > { %v564_v26 = vsel %vm3058_vm11, %v559_v22, %v561_v25  ;;  %570 = vst.msk [vmem:[#allocation2 + $0x190] sm:$0xff] %vm329_vm0, %v561_v25  ;;  %v557_v27 = vpop.permute.xlu1 %556  ;;  %934 = vmatmul.mubr.bf16.vlgmr.msra.gmra.mrb[0].mxu0 %v2460_v23 }
  0xf0   : > { %v563_v28 = vsel %vm3058_vm11, %v557_v27, %v559_v22  ;;  %944 = vmatprep.subr.bf16.mxu0 %v564_v26  ;;  %1830 = vmatprep.mubr.msk.bf16.mxu0 %vm3058_vm11, %v2414_v51  ;;  %vm3062_vm11 = vcmask 891904  }
  0xf1   : > { %945 = vmatpush1.bf16.msra.mxu0 %v563_v28 }
  0xf2   : > { %v574_v29 = vpop.permute.xlu0 %573 }
  0xf3   : > { %v576_v30 = vpop.permute.xlu1 %575 }
  0xf4   : > { %v579_v31 = vsel %vm3060_vm13, %v574_v29, %v576_v30  ;;  %585 = vst.msk [vmem:[#allocation2 + $0x1a8] sm:$0xff] %vm329_vm0, %v576_v30 }
  0xf5   : > { %946 = vmatprep.subr.bf16.mxu0 %v579_v31 }
  0xf6   : > { %v572_v32 = vpop.permute.xlu0 %571  ;;  %v835_v33 = vld [vmem:[#allocation2 + $0x190] sm:$0xff] }
  0xf7   : > { %v578_v34 = vsel %vm3060_vm13, %v572_v32, %v574_v29  ;;  %v589_v35 = vpop.permute.xlu1 %588  ;;  %1029 = vmatpush1.bf16.msra.mxu1 %v835_v33  ;;  %vm3064_vm13 = vcmask 875520  }
  0xf8   : > { %1030 = vmatprep.subr.bf16.mxu1 %v2078_v4  ;;  %947 = vmatpush1.bf16.msra.mxu0 %v578_v34 }
  0xfa   : > { %v591_v36 = vpop.permute.xlu0 %590 }
  0xfb   : > { %v594_v37 = vsel %vm3059_vm15, %v589_v35, %v591_v36  ;;  %600 = vst.msk [vmem:[#allocation2 + $0x1c0] sm:$0xff] %vm329_vm0, %v591_v36  ;;  %v587_v38 = vpop.permute.xlu1 %586  ;;  %v838_v39 = vld [vmem:[#allocation2 + $0x1a8] sm:$0xff] }
  0xfc   : > { %v593_v40 = vsel %vm3059_vm15, %v587_v38, %v589_v35  ;;  %1031 = vmatpush1.bf16.msra.mxu1 %v838_v39  ;;  %948 = vmatprep.subr.bf16.mxu0 %v594_v37  ;;  %vm3061_vm15 = vcmask 883712  }
  0xfd   : > { %1032 = vmatprep.subr.bf16.mxu1 %v2078_v4  ;;  %949 = vmatpush1.bf16.msra.mxu0 %v593_v40 }
  0xfe   : > { %v604_v41 = vpop.permute.xlu0 %603 }
  0xff   : > { %v606_v42 = vpop.permute.xlu1 %605 }
 0x100   : > { %v609_v43 = vsel %vm3062_vm11, %v604_v41, %v606_v42  ;;  %615 = vst.msk [vmem:[#allocation2 + $0x1d8] sm:$0xff] %vm329_vm0, %v606_v42 }
 0x101   : > { %950 = vmatprep.subr.bf16.mxu0 %v609_v43 }
 0x102   : > { %v602_v44 = vpop.permute.xlu0 %601  ;;  %v841_v45 = vld [vmem:[#allocation2 + $0x1c0] sm:$0xff] }
 0x103   : > { %v608_v46 = vsel %vm3062_vm11, %v602_v44, %v604_v41  ;;  %v619_v47 = vpop.permute.xlu1 %618  ;;  %1033 = vmatpush1.bf16.msra.mxu1 %v841_v45  ;;  %vm3066_vm11 = vcmask 859136  }
 0x104   : > { %1034 = vmatprep.subr.bf16.mxu1 %v2078_v4  ;;  %951 = vmatpush1.bf16.msra.mxu0 %v608_v46 }
 0x106   : > { %v621_v48 = vpop.permute.xlu0 %620 }
 0x107   : > { %v624_v49 = vsel %vm3061_vm15, %v619_v47, %v621_v48  ;;  %630 = vst.msk [vmem:[#allocation2 + $0x1f0] sm:$0xff] %vm329_vm0, %v621_v48  ;;  %v617_v50 = vpop.permute.xlu1 %616  ;;  %v844_v51 = vld [vmem:[#allocation2 + $0x1d8] sm:$0xff] }
 0x108   : > { %v623_v52 = vsel %vm3061_vm15, %v617_v50, %v619_v47  ;;  %1035 = vmatpush1.bf16.msra.mxu1 %v844_v51  ;;  %952 = vmatprep.subr.bf16.mxu0 %v624_v49  ;;  %vm3063_vm15 = vcmask 867328  }
 0x109   : > { %1036 = vmatprep.subr.bf16.mxu1 %v2078_v4  ;;  %953 = vmatpush1.bf16.msra.mxu0 %v623_v52  ;;  %v1976_v52 = vld [vmem:[%s3080_s1 + $0x8] ss:$16 sps:$4 sm:$0xff]   ;;  %s3094_s1 = smov 111  }
 0x10a   : > { %v634_v53 = vpop.permute.xlu0 %633 }
 0x10b   : > { %v636_v54 = vpop.permute.xlu1 %635 }
 0x10c   : > { %v639_v55 = vsel %vm3064_vm13, %v634_v53, %v636_v54  ;;  %645 = vst.msk [vmem:[#allocation2 + $0x208] sm:$0xff] %vm329_vm0, %v636_v54  ;;  %v787_v54 = vld [vmem:[#allocation2 + $0x10] sm:$0xff] }
 0x10d   : > { %954 = vmatprep.subr.bf16.mxu0 %v639_v55  ;;  %v814_v55 = vld [vmem:[#allocation2 + $0xe8] sm:$0xff] }
 0x10e   : > { %v632_v56 = vpop.permute.xlu0 %631  ;;  %v847_v57 = vld [vmem:[#allocation2 + $0x1f0] sm:$0xff] }
 0x10f   : > { %v638_v58 = vsel %vm3064_vm13, %v632_v56, %v634_v53  ;;  %v649_v59 = vpop.permute.xlu1 %648  ;;  %1037 = vmatpush1.bf16.msra.mxu1 %v847_v57  ;;  %vm3068_vm13 = vcmask 842752   ;;  %v811_v53 = vld [vmem:[#allocation2 + $0xd0] sm:$0xff]  ;;  %v790_v57 = vld [vmem:[#allocation2 + $0x28] sm:$0xff] }
 0x110   : > { %1038 = vmatprep.subr.bf16.mxu1 %v2078_v4  ;;  %955 = vmatpush1.bf16.msra.mxu0 %v638_v58  ;;  %v817_v58 = vld [vmem:[#allocation2 + $0x100] sm:$0xff] }
 0x112   : > { %v651_v60 = vpop.permute.xlu0 %650 }
 0x113   : > { %v654_v61 = vsel %vm3063_vm15, %v649_v59, %v651_v60  ;;  %660 = vst.msk [vmem:[#allocation2 + $0x220] sm:$0xff] %vm329_vm0, %v651_v60  ;;  %v647_v62 = vpop.permute.xlu1 %646  ;;  %v850_v63 = vld [vmem:[#allocation2 + $0x208] sm:$0xff]  ;;  %v796_v60 = vld [vmem:[#allocation2 + $0x58] sm:$0xff] }
 0x114   : > { %v653_v0 = vsel %vm3063_vm15, %v647_v62, %v649_v59  ;;  %1039 = vmatpush1.bf16.msra.mxu1 %v850_v63  ;;  %956 = vmatprep.subr.bf16.mxu0 %v654_v61  ;;  %vm3065_vm15 = vcmask 850944   ;;  %v793_v59 = vld [vmem:[#allocation2 + $0x40] sm:$0xff]  ;;  %v823_v61 = vld [vmem:[#allocation2 + $0x130] sm:$0xff]  ;;  %v826_v63 = vld [vmem:[#allocation2 + $0x148] sm:$0xff] }
 0x115   : > { %1040 = vmatprep.subr.bf16.mxu1 %v2078_v4  ;;  %957 = vmatpush1.bf16.msra.mxu0 %v653_v0  ;;  %v799_v62 = vld [vmem:[#allocation2 + $0x70] sm:$0xff]  ;;  %v829_v0 = vld [vmem:[#allocation2 + $0x160] sm:$0xff] }
 0x116   : > { %v664_v5 = vpop.permute.xlu0 %663 }
 0x117   : > { %v666_v2 = vpop.permute.xlu1 %665 }
 0x118   : > { %v669_v1 = vsel %vm3066_vm11, %v664_v5, %v666_v2  ;;  %675 = vst.msk [vmem:[#allocation2 + $0x238] sm:$0xff] %vm329_vm0, %v666_v2  ;;  %v832_v2 = vld [vmem:[#allocation2 + $0x178] sm:$0xff] }
 0x119   : > { %958 = vmatprep.subr.bf16.mxu0 %v669_v1  ;;  %v808_v1 = vld [vmem:[#allocation2 + $0xb8] sm:$0xff] }
 0x11a   : > { %v662_v6 = vpop.permute.xlu0 %661  ;;  %v853_v7 = vld [vmem:[#allocation2 + $0x220] sm:$0xff] }
 0x11b   : > { %v668_v8 = vsel %vm3066_vm11, %v662_v6, %v664_v5  ;;  %v679_v9 = vpop.permute.xlu1 %678  ;;  %1041 = vmatpush1.bf16.msra.mxu1 %v853_v7  ;;  %vm727_vm11 = vcmask 826368   ;;  %v805_v5 = vld [vmem:[#allocation2 + $0xa0] sm:$0xff]  ;;  %v1113_v7 = vlaneseq }
 0x11c   : > { %1042 = vmatprep.subr.bf16.mxu1 %v2078_v4  ;;  %959 = vmatpush1.bf16.msra.mxu0 %v668_v8 }
 0x11e   : > { %v681_v10 = vpop.permute.xlu0 %680 }
 0x11f   : > { %v684_v11 = vsel %vm3065_vm15, %v679_v9, %v681_v10  ;;  %690 = vst.msk [vmem:[#allocation2 + $0x250] sm:$0xff] %vm329_vm0, %v681_v10  ;;  %v677_v12 = vpop.permute.xlu1 %676  ;;  %v856_v13 = vld [vmem:[#allocation2 + $0x238] sm:$0xff] }
 0x120   : > { %v683_v14 = vsel %vm3065_vm15, %v677_v12, %v679_v9  ;;  %1043 = vmatpush1.bf16.msra.mxu1 %v856_v13  ;;  %960 = vmatprep.subr.bf16.mxu0 %v684_v11  ;;  %vm3067_vm15 = vcmask 834560   ;;  %v1114_v9 = vand.u32 127, %v1113_v7 }
 0x121   : > { %1044 = vmatprep.subr.bf16.mxu1 %v2078_v4  ;;  %961 = vmatpush1.bf16.msra.mxu0 %v683_v14 }
 0x122   : > { %v694_v15 = vpop.permute.xlu0 %693  ;;  %v1118_v14 = vadd.s32 4294967281, %v1114_v9 }
 0x123   : > { %v696_v16 = vpop.permute.xlu1 %695 }
 0x124   : > { %v699_v17 = vsel %vm3068_vm13, %v694_v15, %v696_v16  ;;  %705 = vst.msk [vmem:[#allocation2 + $0x268] sm:$0xff] %vm329_vm0, %v696_v16 }
 0x125   : > { %962 = vmatprep.subr.bf16.mxu0 %v699_v17 }
 0x126   : > { %v692_v18 = vpop.permute.xlu0 %691  ;;  %v859_v19 = vld [vmem:[#allocation2 + $0x250] sm:$0xff] }
 0x127   : > { %v698_v20 = vsel %vm3068_vm13, %v692_v18, %v694_v15  ;;  %v709_v21 = vpop.permute.xlu1 %708  ;;  %1045 = vmatpush1.bf16.msra.mxu1 %v859_v19  ;;  %vm757_vm13 = vcmask 809984  }
 0x128   : > { %1046 = vmatprep.subr.bf16.mxu1 %v2078_v4  ;;  %963 = vmatpush1.bf16.msra.mxu0 %v698_v20 }
 0x12a   : > { %v711_v22 = vpop.permute.xlu0 %710 }
 0x12b   : > { %v714_v24 = vsel %vm3067_vm15, %v709_v21, %v711_v22  ;;  %720 = vst.msk [vmem:[#allocation2 + $0x280] sm:$0xff] %vm329_vm0, %v711_v22  ;;  %v707_v25 = vpop.permute.xlu1 %706  ;;  %v862_v26 = vld [vmem:[#allocation2 + $0x268] sm:$0xff] }
 0x12c   : > { %v713_v27 = vsel %vm3067_vm15, %v707_v25, %v709_v21  ;;  %1047 = vmatpush1.bf16.msra.mxu1 %v862_v26  ;;  %964 = vmatprep.subr.bf16.mxu0 %v714_v24  ;;  %vm3069_vm15 = vcmask 818176  }
 0x12d   : > { %1048 = vmatprep.subr.bf16.mxu1 %v2078_v4  ;;  %965 = vmatpush1.bf16.msra.mxu0 %v713_v27 }
 0x12e   : > { %v724_v28 = vpop.permute.xlu0 %723 }
 0x12f   : > { %v726_v29 = vpop.permute.xlu1 %725 }
 0x130   : > { %v729_v30 = vsel %vm727_vm11, %v724_v28, %v726_v29  ;;  %735 = vst.msk [vmem:[#allocation2 + $0x298] sm:$0xff] %vm329_vm0, %v726_v29 }
 0x131   : > { %966 = vmatprep.subr.bf16.mxu0 %v729_v30 }
 0x132   : > { %v722_v31 = vpop.permute.xlu0 %721  ;;  %v865_v32 = vld [vmem:[#allocation2 + $0x280] sm:$0xff] }
 0x133   : > { %v728_v33 = vsel %vm727_vm11, %v722_v31, %v724_v28  ;;  %v739_v34 = vpop.permute.xlu1 %738  ;;  %1049 = vmatpush1.bf16.msra.mxu1 %v865_v32 }
 0x134   : > { %1050 = vmatprep.subr.bf16.mxu1 %v2078_v4  ;;  %967 = vmatpush1.bf16.msra.mxu0 %v728_v33 }
 0x136   : > { %v741_v35 = vpop.permute.xlu0 %740 }
 0x137   : > { %v744_v36 = vsel %vm3069_vm15, %v739_v34, %v741_v35  ;;  %750 = vst.msk [vmem:[#allocation2 + $0x2b0] sm:$0xff] %vm329_vm0, %v741_v35  ;;  %v737_v37 = vpop.permute.xlu1 %736  ;;  %v868_v38 = vld [vmem:[#allocation2 + $0x298] sm:$0xff] }
 0x138   : > { %v743_v39 = vsel %vm3069_vm15, %v737_v37, %v739_v34  ;;  %1051 = vmatpush1.bf16.msra.mxu1 %v868_v38  ;;  %968 = vmatprep.subr.bf16.mxu0 %v744_v36  ;;  %vm3070_vm15 = vcmask 801792  }
 0x139   : > { %1052 = vmatprep.subr.bf16.mxu1 %v2078_v4  ;;  %969 = vmatpush1.bf16.msra.mxu0 %v743_v39 }
 0x13a   : > { %v754_v40 = vpop.permute.xlu0 %753 }
 0x13b   : > { %v756_v41 = vpop.permute.xlu1 %755 }
 0x13c   : > { %v759_v42 = vsel %vm757_vm13, %v754_v40, %v756_v41  ;;  %765 = vst.msk [vmem:[#allocation2 + $0x2c8] sm:$0xff] %vm329_vm0, %v756_v41 }
 0x13d   : > { %970 = vmatprep.subr.bf16.mxu0 %v759_v42 }
 0x13e   : > { %v752_v43 = vpop.permute.xlu0 %751  ;;  %v871_v44 = vld [vmem:[#allocation2 + $0x2b0] sm:$0xff] }
 0x13f   : > { %v758_v45 = vsel %vm757_vm13, %v752_v43, %v754_v40  ;;  %v769_v46 = vpop.permute.xlu1 %768  ;;  %1053 = vmatpush1.bf16.msra.mxu1 %v871_v44  ;;  %v1116_v43 = vadd.s32 256, %v1114_v9 }
 0x140   : > { %1054 = vmatprep.subr.bf16.mxu1 %v2078_v4  ;;  %971 = vmatpush1.bf16.msra.mxu0 %v758_v45 }
 0x142   : > { %v771_v47 = vpop.permute.xlu0 %770 }
 0x143   : > { %v774_v48 = vsel %vm3070_vm15, %v769_v46, %v771_v47  ;;  %780 = vst.msk [vmem:[#allocation2 + $0x2e0] sm:$0xff] %vm329_vm0, %v771_v47  ;;  %v767_v49 = vpop.permute.xlu1 %766  ;;  %v874_v50 = vld [vmem:[#allocation2 + $0x2c8] sm:$0xff]  ;;  %vm1121_vm0 = vcmp.ge.s32.totalorder %v1118_v14, 0 }
 0x144   : > { %v773_v51 = vsel %vm3070_vm15, %v767_v49, %v769_v46  ;;  %1055 = vmatpush1.bf16.msra.mxu1 %v874_v50  ;;  %972 = vmatprep.subr.bf16.mxu0 %v774_v48  ;;  %vm1843_vm15 = vmpackc.low %vm1121_vm0, %vm1121_vm0  ;;  %v1120_v48 = vadd.s32 4294967281, %v1116_v43 }
 0x145   : > { %1056 = vmatprep.subr.bf16.mxu1 %v2078_v4  ;;  %973 = vmatpush1.bf16.msra.mxu0 %v773_v51  ;;  %v820_v4 = vld [vmem:[#allocation2 + $0x118] sm:$0xff] }
 0x146   : > { %1846 = vmatprep.subr.bf16.mxu0 %v811_v53 }
 0x148   : > { %977 = vmatmul.mubr.bf16.vlgmr.msra.gmra.mrb[0].mxu0 %v1976_v52 }
 0x149   : > { %1847 = vmatpush3.bf16.msra.mxu0 %v787_v54  ;;  %1019 = vmatprep.mubr.bf16.mxu0 %v2290_v3  ;;  %v802_v3 = vld [vmem:[#allocation2 + $0x88] sm:$0xff] }
 0x14a   : > { %v877_v56 = vld [vmem:[#allocation2 + $0x2e0] sm:$0xff]  ;;  %1848 = vmatprep.subr.bf16.mxu0 %v814_v55 }
 0x14b   : > { %1057 = vmatpush1.bf16.msra.mxu1 %v877_v56 }
 0x14d   : > { %1849 = vmatpush3.bf16.msra.mxu0 %v790_v57  ;;  %v1979_v57 = vld [vmem:[%s2999_s2 + $0x4] ss:$16 sps:$4 sm:$0xff]  }
 0x14e   : > { %1850 = vmatprep.subr.bf16.mxu0 %v817_v58  ;;  %1061 = vmatmul.mubr.bf16.vlgmr.msra.gmra.mrb[0].mxu1 %v1976_v52 }
 0x14f   : > { %1624 = vmatprep.mubr.bf16.mxu1 %v1979_v57 }
 0x151   : > { %1851 = vmatpush3.bf16.msra.mxu0 %v793_v59 }
 0x152   : > { %1852 = vmatprep.subr.bf16.mxu0 %v820_v4 }
 0x153   : > { %v1074_v8 = vpop.permute.xlu0 %1073 }
 0x154   : > { %v1079_v6 = vpop.permute.xlu1 %1078 }
 0x155   : > { %1853 = vmatpush3.bf16.msra.mxu0 %v796_v60 }
 0x156   : > { %1854 = vmatprep.subr.bf16.mxu0 %v823_v61 }
 0x157   : > { %v1097_v20 = vpop.permute.xlu0 %1096 }
 0x158   : > { %v1092_v11 = vpop.permute.xlu1 %1091 }
 0x159   : > { %1855 = vmatpush3.bf16.msra.mxu0 %v799_v62 }
 0x15a   : > { %1856 = vmatprep.subr.bf16.mxu0 %v826_v63 }
 0x15d   : > { %1857 = vmatpush3.bf16.msra.mxu0 %v802_v3 }
 0x15e   : > { %1858 = vmatprep.subr.bf16.mxu0 %v829_v0 }
 0x161   : > { %1859 = vmatpush3.bf16.msra.mxu0 %v805_v5 }
 0x162   : > { %1860 = vmatprep.subr.bf16.mxu0 %v832_v2 }
 0x165   : > { %1861 = vmatpush3.bf16.msra.mxu0 %v808_v1 }
 0x168   : > { %1020 = vmatmul.mubr.bf16.vlgmr.msra.gmra.mrb[4].mxu0 %v2460_v23 }
 0x21b   : > { %v978_v10 = vpop.f32.mrb[0].mxu0 }
 0x21c   : > { %v1081_v12 = vmul.f32 %v1074_v8, %v978_v10  ;;  %v980_v13 = vpop.f32.mrb[1].mxu0 }
 0x21d   : > { %v1082_v15 = vmul.f32 %v1074_v8, %v980_v13  ;;  %v982_v16 = vpop.f32.mrb[2].mxu0 }
 0x21e   : > { %v1099_v17 = vadd.f32 %v1092_v11, %v1081_v12  ;;  %v1084_v18 = vmul.f32 %v1079_v6, %v982_v16  ;;  %v984_v19 = vpop.f32.mrb[3].mxu0 }
 0x21f   : > { %v1100_v21 = vadd.f32 %v1092_v11, %v1082_v15  ;;  %v1085_v22 = vmul.f32 %v1079_v6, %v984_v19 }
 0x220   : > { %v1105_v24 = vmax.f32 %v1099_v17, 0.0  ;;  %v1102_v25 = vadd.f32 %v1097_v20, %v1084_v18 }
 0x221   : > { %v1103_v23 = vadd.f32 %v1097_v20, %v1085_v22  ;;  %v1062_v26 = vpop.f32.mrb[0].mxu1  ;;  %v1106_v29 = vmax.f32 %v1100_v21, 0.0 }
 0x222   : > { %v1108_v27 = vmax.f32 %v1102_v25, 0.0  ;;  %v1064_v28 = vpop.f32.mrb[1].mxu1  ;;  %v1130_v32 = vsel %vm1121_vm0, %v1105_v24, 0.0 }
 0x223   : > { %v1109_v30 = vmax.f32 %v1103_v23, 0.0  ;;  %v1065_v31 = vpop.f32.mrb[2].mxu1  ;;  %v1678_v28 = vld [vmem:[%s3002_s5] sm:$0xff] }
 0x224   : > { %v1133_v33 = vsel %vm1121_vm0, %v1108_v27, 0.0  ;;  %v1844_v34 = vpack.c.bf16 %v1108_v27, %v1105_v24  ;;  %v1067_v35 = vpop.f32.mrb[3].mxu1 }
 0x225   : > { %v2532_v36 = vpack.c.bf16 %v1133_v33, %v1130_v32  ;;  %v2534_v37 = vpack.c.bf16 %v1109_v30, %v1106_v29  ;;  %v1679_v29 = vld [vmem:[%s3002_s5 + $0x8] sm:$0xff] }
 0x226   : > { %v1695_v35 = vld [vmem:[%s3003_s6 + $0x8] sm:$0xff] }
 0x227   : > { %1158 = vrot.lane.b32.xlu0 %v2534_v37, %s2064_s21  ;;  %1146 = vrot.lane.b32.xlu1 %v2534_v37, %s2063_s20 }
 0x228   : > { %1592 = vmatprep.subr.bf16.mxu1 %v2534_v37 }
 0x229   : > { %1845 = vmatpush1.bf16.msk.msra.mxu1 %vm1843_vm15, %v1844_v34  ;;  %vm1126_vm15 = vcmp.lt.s32.totalorder %v1120_v48, 256  ;;  %v1694_v34 = vld [vmem:[%s3003_s6] sm:$0xff] }
 0x22b   : > { %1156 = vrot.lane.b32.xlu0 %v2532_v36, %s2064_s21  ;;  %1144 = vrot.lane.b32.xlu1 %v2532_v36, %s2063_s20 }
 0x22f   : > { %1182 = vrot.lane.b32.xlu0 %v2534_v37, %s3072_s23  ;;  %1170 = vrot.lane.b32.xlu1 %v2534_v37, %s3073_s22 }
 0x233   : > { %1180 = vrot.lane.b32.xlu0 %v2532_v36, %s3072_s23  ;;  %1168 = vrot.lane.b32.xlu1 %v2532_v36, %s3073_s22  ;;  %s3091_s23 = smov 113   ;;  %s3092_s22 = smov 112  }
 0x237   : > { %1206 = vrot.lane.b32.xlu0 %v2534_v37, %s3071_s8  ;;  %1194 = vrot.lane.b32.xlu1 %v2534_v37, %s3082_s12 }
 0x23b   : > { %1204 = vrot.lane.b32.xlu0 %v2532_v36, %s3071_s8  ;;  %1192 = vrot.lane.b32.xlu1 %v2532_v36, %s3082_s12  ;;  %v1862_v38 = vpop.f32.mrb[4].mxu0  ;;  %s3090_s8 = smov 115  }
 0x23c   : > { %v1863_v39 = vpop.f32.mrb[5].mxu0 }
 0x23d   : > { %v1864_v40 = vadd.f32 %v1863_v39, %v1862_v38  ;;  %v1865_v41 = vpop.f32.mrb[6].mxu0 }
 0x23e   : > { %v1866_v42 = vpop.f32.mrb[7].mxu0 }
 0x23f   : > { %v1867_v44 = vadd.f32 %v1866_v42, %v1865_v41  ;;  %v1063_v45 = vadd.f32 %v1864_v40, %v1062_v26  ;;  %1230 = vrot.lane.b32.xlu0 %v2534_v37, %s3083_s17  ;;  %1218 = vrot.lane.b32.xlu1 %v2534_v37, %s3084_s19 }
 0x241   : > { %v1083_v46 = vmul.f32 %v1074_v8, %v1063_v45  ;;  %v1066_v47 = vadd.f32 %v1867_v44, %v1065_v31 }
 0x243   : > { %v1101_v49 = vadd.f32 %v1092_v11, %v1083_v46  ;;  %v1086_v50 = vmul.f32 %v1079_v6, %v1066_v47  ;;  %1228 = vrot.lane.b32.xlu0 %v2532_v36, %s3083_s17  ;;  %1216 = vrot.lane.b32.xlu1 %v2532_v36, %s3084_s19 }
 0x245   : > { %v1107_v51 = vmax.f32 %v1101_v49, 0.0  ;;  %v1104_v52 = vadd.f32 %v1097_v20, %v1086_v50 }
 0x247   : > { %v1110_v53 = vmax.f32 %v1104_v52, 0.0  ;;  %1254 = vrot.lane.b32.xlu0 %v2534_v37, %s3085_s16  ;;  %1242 = vrot.lane.b32.xlu1 %v2534_v37, %s3086_s18  ;;  %v1132_v54 = vsel %vm1126_vm15, %v1107_v51, 0.0 }
 0x249   : > { %v1135_v55 = vsel %vm1126_vm15, %v1110_v53, 0.0  ;;  %vm3123_vm15 = vcmask 891904  }
 0x24a   : > { %v2573_v56 = vpack.c.bf16 %v1135_v55, %v1132_v54 }
 0x24b   : > { %1252 = vrot.lane.b32.xlu0 %v2532_v36, %s3085_s16  ;;  %1240 = vrot.lane.b32.xlu1 %v2532_v36, %s3086_s18 }
 0x24f   : > { %1278 = vrot.lane.b32.xlu0 %v2534_v37, %s3087_s15  ;;  %1266 = vrot.lane.b32.xlu1 %v2534_v37, %s3088_s30 }
 0x253   : > { %1276 = vrot.lane.b32.xlu0 %v2532_v36, %s3087_s15  ;;  %1264 = vrot.lane.b32.xlu1 %v2532_v36, %s3088_s30 }
 0x257   : > { %1302 = vrot.lane.b32.xlu0 %v2534_v37, %s3089_s10  ;;  %1290 = vrot.lane.b32.xlu1 %v2534_v37, %s3090_s8 }
 0x25b   : > { %1300 = vrot.lane.b32.xlu0 %v2532_v36, %s3089_s10  ;;  %1288 = vrot.lane.b32.xlu1 %v2532_v36, %s3090_s8 }
 0x25f   : > { %1314 = vrot.lane.b32.xlu1 %v2534_v37, %s3091_s23  ;;  %1148 = vrot.lane.b32.xlu0 %v2573_v56, %s2063_s20  ;;  %s3096_s20 = smov 110  }
 0x263   : > { %1312 = vrot.lane.b32.xlu1 %v2532_v36, %s3091_s23  ;;  %1326 = vrot.lane.b32.xlu0 %v2534_v37, %s3092_s22 }
 0x267   : > { %1160 = vrot.lane.b32.xlu1 %v2573_v56, %s2064_s21  ;;  %1172 = vrot.lane.b32.xlu0 %v2573_v56, %s3093_s0  ;;  %s3097_s21 = smov 122   ;;  %s3098_s0 = smov 109  }
 0x26b   : > { %1338 = vrot.lane.b32.xlu1 %v2534_v37, %s3094_s1  ;;  %1324 = vrot.lane.b32.xlu0 %v2532_v36, %s3092_s22 }
 0x26f   : > { %1184 = vrot.lane.b32.xlu1 %v2573_v56, %s3095_s3  ;;  %1196 = vrot.lane.b32.xlu0 %v2573_v56, %s3082_s12  ;;  %s3099_s3 = smov 108   ;;  %s3100_s12 = smov 107  }
 0x273   : > { %1336 = vrot.lane.b32.xlu1 %v2532_v36, %s3094_s1  ;;  %1350 = vrot.lane.b32.xlu0 %v2534_v37, %s3096_s20 }
 0x277   : > { %1208 = vrot.lane.b32.xlu1 %v2573_v56, %s3097_s21  ;;  %1220 = vrot.lane.b32.xlu0 %v2573_v56, %s3084_s19 }
 0x27b   : > { %1362 = vrot.lane.b32.xlu1 %v2534_v37, %s3098_s0  ;;  %1348 = vrot.lane.b32.xlu0 %v2532_v36, %s3096_s20 }
 0x27f   : > { %1232 = vrot.lane.b32.xlu1 %v2573_v56, %s3083_s17  ;;  %1244 = vrot.lane.b32.xlu0 %v2573_v56, %s3086_s18  ;;  %s3106_s18 = smov 101  }
 0x283   : > { %1360 = vrot.lane.b32.xlu1 %v2532_v36, %s3098_s0  ;;  %1374 = vrot.lane.b32.xlu0 %v2534_v37, %s3099_s3 }
 0x287   : > { %1256 = vrot.lane.b32.xlu1 %v2573_v56, %s3085_s16  ;;  %1268 = vrot.lane.b32.xlu0 %v2573_v56, %s3088_s30  ;;  %s3101_s16 = smov 106   ;;  %s3108_s30 = smov 99  }
 0x28b   : > { %1386 = vrot.lane.b32.xlu1 %v2534_v37, %s3100_s12  ;;  %1372 = vrot.lane.b32.xlu0 %v2532_v36, %s3099_s3 }
 0x28f   : > { %1280 = vrot.lane.b32.xlu1 %v2573_v56, %s3087_s15  ;;  %1292 = vrot.lane.b32.xlu0 %v2573_v56, %s3090_s8  ;;  %s3102_s8 = smov 105   ;;  %s3107_s15 = smov 100  }
 0x293   : > { %1384 = vrot.lane.b32.xlu1 %v2532_v36, %s3100_s12  ;;  %1398 = vrot.lane.b32.xlu0 %v2534_v37, %s3101_s16 }
 0x297   : > { %1304 = vrot.lane.b32.xlu1 %v2573_v56, %s3089_s10  ;;  %1316 = vrot.lane.b32.xlu0 %v2573_v56, %s3091_s23  ;;  %s3103_s23 = smov 104   ;;  %s3109_s10 = smov 98  }
 0x299   : > { %v2658_v58 = vpop.permute.xlu0 %1158  ;;  %v1147_v59 = vpop.permute.xlu1 %1146 }
 0x29b   : > { %1410 = vrot.lane.b32.xlu1 %v2534_v37, %s3102_s8  ;;  %1396 = vrot.lane.b32.xlu0 %v2532_v36, %s3101_s16 }
 0x29d   : > { %v2664_v4 = vpop.permute.xlu0 %1156  ;;  %v1145_v60 = vpop.permute.xlu1 %1144 }
 0x29e   : > { %v1150_v23 = vsel %vm337_vm1, %v1145_v60, %v1147_v59  ;;  %v1162_v33 = vsel %vm352_vm2, %v2664_v4, %v2658_v58 }
 0x29f   : > { %1328 = vrot.lane.b32.xlu1 %v2573_v56, %s3092_s22  ;;  %1340 = vrot.lane.b32.xlu0 %v2573_v56, %s3094_s1  ;;  %s3104_s1 = smov 103   ;;  %s3105_s22 = smov 102  }
 0x2a1   : > { %v2670_v61 = vpop.permute.xlu0 %1182  ;;  %v2672_v62 = vpop.permute.xlu1 %1170 }
 0x2a3   : > { %1408 = vrot.lane.b32.xlu1 %v2532_v36, %s3102_s8  ;;  %1422 = vrot.lane.b32.xlu0 %v2534_v37, %s3103_s23 }
 0x2a5   : > { %v2678_v63 = vpop.permute.xlu0 %1180  ;;  %v2680_v3 = vpop.permute.xlu1 %1168 }
 0x2a6   : > { %v1174_v39 = vsel %vm367_vm3, %v2680_v3, %v2672_v62  ;;  %v1186_v43 = vsel %vm382_vm4, %v2678_v63, %v2670_v61 }
 0x2a7   : > { %1352 = vrot.lane.b32.xlu1 %v2573_v56, %s3096_s20  ;;  %1364 = vrot.lane.b32.xlu0 %v2573_v56, %s3098_s0  ;;  %s1842_s0 = sshll.u32 %s2053_s27, 9 }
 0x2a8   : > { %s2947_s17 = scalar_lea.hbm %s3004_s7, %s1842_s0 }
 0x2a9   : > { %v2686_v0 = vpop.permute.xlu0 %1206  ;;  %v2688_v5 = vpop.permute.xlu1 %1194 }
 0x2ab   : > { %1434 = vrot.lane.b32.xlu1 %v2534_v37, %s3104_s1  ;;  %1420 = vrot.lane.b32.xlu0 %v2532_v36, %s3103_s23 }
 0x2ad   : > { %v2694_v2 = vpop.permute.xlu0 %1204  ;;  %v2696_v1 = vpop.permute.xlu1 %1192 }
 0x2ae   : > { %v1198_v47 = vsel %vm397_vm5, %v2696_v1, %v2688_v5  ;;  %v1210_v51 = vsel %vm412_vm6, %v2694_v2, %v2686_v0 }
 0x2af   : > { %1376 = vrot.lane.b32.xlu1 %v2573_v56, %s3099_s3  ;;  %1388 = vrot.lane.b32.xlu0 %v2573_v56, %s3100_s12 }
 0x2b1   : > { %v2702_v6 = vpop.permute.xlu0 %1230  ;;  %v2704_v7 = vpop.permute.xlu1 %1218 }
 0x2b3   : > { %1432 = vrot.lane.b32.xlu1 %v2532_v36, %s3104_s1  ;;  %1446 = vrot.lane.b32.xlu0 %v2534_v37, %s3105_s22 }
 0x2b5   : > { %v2710_v8 = vpop.permute.xlu0 %1228  ;;  %v2712_v9 = vpop.permute.xlu1 %1216 }
 0x2b6   : > { %v1222_v55 = vsel %vm427_vm7, %v2712_v9, %v2704_v7 }
 0x2b7   : > { %1400 = vrot.lane.b32.xlu1 %v2573_v56, %s3101_s16  ;;  %1412 = vrot.lane.b32.xlu0 %v2573_v56, %s3102_s8  ;;  %s2094_s16 = smov [#allocation4]  }
 0x2b8   : > { %s1987_s8 = sshll.u32 %s2094_s16, 4  ;;  %s1988_s8 = int_to_ptr.vmem [resolvable:$false] %s1987_s8 }
 0x2b9   : > { %v2718_v10 = vpop.permute.xlu0 %1254  ;;  %v2720_v11 = vpop.permute.xlu1 %1242 }
 0x2bb   : > { %1458 = vrot.lane.b32.xlu1 %v2534_v37, %s3106_s18  ;;  %1444 = vrot.lane.b32.xlu0 %v2532_v36, %s3105_s22 }
 0x2bd   : > { %v2726_v12 = vpop.permute.xlu0 %1252  ;;  %v2728_v13 = vpop.permute.xlu1 %1240 }
 0x2bf   : > { %1424 = vrot.lane.b32.xlu1 %v2573_v56, %s3103_s23  ;;  %1436 = vrot.lane.b32.xlu0 %v2573_v56, %s3104_s1  ;;  %s1989_s23 = scalar_lea.vmem %s1988_s8, 1024 }
 0x2c1   : > { %v2734_v14 = vpop.permute.xlu0 %1278  ;;  %v2736_v15 = vpop.permute.xlu1 %1266 }
 0x2c3   : > { %1456 = vrot.lane.b32.xlu1 %v2532_v36, %s3106_s18  ;;  %1470 = vrot.lane.b32.xlu0 %v2534_v37, %s3107_s15 }
 0x2c5   : > { %v2742_v16 = vpop.permute.xlu0 %1276  ;;  %v2744_v17 = vpop.permute.xlu1 %1264 }
 0x2c7   : > { %1448 = vrot.lane.b32.xlu1 %v2573_v56, %s3105_s22  ;;  %1460 = vrot.lane.b32.xlu0 %v2573_v56, %s3106_s18 }
 0x2c9   : > { %v2750_v18 = vpop.permute.xlu0 %1302  ;;  %v2752_v19 = vpop.permute.xlu1 %1290 }
 0x2cb   : > { %1482 = vrot.lane.b32.xlu1 %v2534_v37, %s3108_s30  ;;  %1468 = vrot.lane.b32.xlu0 %v2532_v36, %s3107_s15 }
 0x2cd   : > { %v2758_v20 = vpop.permute.xlu0 %1300  ;;  %v2760_v21 = vpop.permute.xlu1 %1288 }
 0x2cf   : > { %1472 = vrot.lane.b32.xlu1 %v2573_v56, %s3107_s15  ;;  %1484 = vrot.lane.b32.xlu0 %v2573_v56, %s3108_s30 }
 0x2d1   : > { %v2766_v22 = vpop.permute.xlu1 %1314  ;;  %v1149_v24 = vpop.permute.xlu0 %1148 }
 0x2d2   : > { %v1151_v25 = vsel %vm337_vm1, %v1147_v59, %v1149_v24  ;;  %v1234_v59 = vsel %vm442_vm8, %v2710_v8, %v2702_v6  ;;  %vm3110_vm1 = vcmask 949248  }
 0x2d3   : > { %1480 = vrot.lane.b32.xlu1 %v2532_v36, %s3108_s30  ;;  %1494 = vrot.lane.b32.xlu0 %v2534_v37, %s3109_s10  ;;  %s293_s30 = sand.u32 1, %s2045_s25  }
 0x2d4   : > { %1594 = vmatprep.subr.bf16.mxu1 %v1151_v25  ;;  %s2951_s27 = scalar_lea.sflag [#allocation5], %s293_s30 }
 0x2d5   : > { %1595 = vmatpush1.bf16.msra.mxu1 %v1150_v23  ;;  %v2774_v26 = vpop.permute.xlu1 %1312  ;;  %v2776_v27 = vpop.permute.xlu0 %1326 }
 0x2d7   : > { %1496 = vrot.lane.b32.xlu1 %v2573_v56, %s3109_s10  ;;  %1492 = vrot.lane.b32.xlu0 %v2532_v36, %s3109_s10  ;;  %s1821_s10 = sshll.u32 %s293_s30, 5 }
 0x2d8   : > { %s295_s20 = scalar_lea.vmem [#allocation4], %s1821_s10 }
 0x2d9   : > { %v1161_v30 = vpop.permute.xlu1 %1160  ;;  %v1173_v31 = vpop.permute.xlu0 %1172  ;;  %s1734_s21 = sshll.u32 %s295_s20, 4  ;;  %s2942_s21 = int_to_ptr.vmem [resolvable:$true] %s1734_s21 }
 0x2da   : > { %v1163_v32 = vsel %vm352_vm2, %v2658_v58, %v1161_v30  ;;  %v1175_v37 = vsel %vm367_vm3, %v2672_v62, %v1173_v31  ;;  %v1246_v62 = vsel %vm457_vm9, %v2728_v13, %v2720_v11  ;;  %vm3111_vm2 = vmmov %vm3110_vm1  ;;  %vm3112_vm3 = vcmask 932864   ;;  %s1983_s19 = scalar_lea.vmem %s2942_s21, 512  ;;  %p1990_p1 = scmp.lt.s32.totalorder %s2942_s21, %s1988_s8 }
 0x2db   : > { %1682 = vperm.xlu1 %1966, %v1678_v28   ;;  %1687 = vperm.xlu0 %1965, %v1679_v29   ;;  %p1984_p12 = scmp.ne.s32.totalorder %s2942_s21, %s1983_s19  ;;  %p1991_p2 = scmp.lt.s32.totalorder %s1989_s23, %s1983_s19 }
 0x2dc   : > { %1596 = vmatprep.subr.bf16.mxu1 %v1163_v32 }
 0x2dd   : > { %1597 = vmatpush1.bf16.msra.mxu1 %v1162_v33  ;;  %v2799_v36 = vpop.permute.xlu1 %1338  ;;  %v2803_v38 = vpop.permute.xlu0 %1324  ;;  %p1985_p13 = pnand %p1984_p12, %p2177_p4  ;;  %p1992_p3 = por %p1991_p2, %p1990_p1 }
 0x2de   : > { %1598 = vmatprep.subr.bf16.mxu1 %v1175_v37 }
 0x2df   : > { %1698 = vperm.xlu1 %1966, %v1694_v34   ;;  %1703 = vperm.xlu0 %1965, %v1695_v35   ;;  %p1986_p0 = pneg %p1985_p13 }
 0x2e1   : > { %1599 = vmatpush1.bf16.msra.mxu1 %v1174_v39  ;;  %v1185_v40 = vpop.permute.xlu1 %1184  ;;  %v1197_v41 = vpop.permute.xlu0 %1196  ;;  %p1993_p5 = pnand %p1992_p3, %p1986_p0 }
 0x2e2   : > { %v1187_v42 = vsel %vm382_vm4, %v2670_v61, %v1185_v40  ;;  %v1199_v45 = vsel %vm397_vm5, %v2688_v5, %v1197_v41  ;;  %v1258_v5 = vsel %vm472_vm10, %v2726_v12, %v2718_v10  ;;  %vm3113_vm4 = vmmov %vm3112_vm3  ;;  %vm3114_vm5 = vcmask 924672  }
 0x2e3   : > { %1600 = vmatprep.subr.bf16.mxu1 %v1187_v42 }
 0x2e5   : > { %1601 = vmatpush1.bf16.msra.mxu1 %v1186_v43  ;;  %v2813_v44 = vpop.permute.xlu1 %1336  ;;  %v2817_v46 = vpop.permute.xlu0 %1350 }
 0x2e6   : > { %1602 = vmatprep.subr.bf16.mxu1 %v1199_v45 }
 0x2e9   : > { %1603 = vmatpush1.bf16.msra.mxu1 %v1198_v47  ;;  %v1209_v48 = vpop.permute.xlu1 %1208  ;;  %v1221_v49 = vpop.permute.xlu0 %1220 }
 0x2ea   : > { %v1211_v50 = vsel %vm412_vm6, %v2686_v0, %v1209_v48  ;;  %v1223_v53 = vsel %vm427_vm7, %v2704_v7, %v1221_v49  ;;  %v1270_v7 = vsel %vm487_vm12, %v2744_v17, %v2736_v15  ;;  %vm3115_vm6 = vmmov %vm3114_vm5  ;;  %vm3116_vm7 = vcmask 916480  }
 0x2eb   : > { %1604 = vmatprep.subr.bf16.mxu1 %v1211_v50 }
 0x2ed   : > { %1605 = vmatpush1.bf16.msra.mxu1 %v1210_v51  ;;  %v2827_v52 = vpop.permute.xlu1 %1362  ;;  %v2831_v54 = vpop.permute.xlu0 %1348 }
 0x2ee   : > { %1606 = vmatprep.subr.bf16.mxu1 %v1223_v53 }
 0x2f1   : > { %1607 = vmatpush1.bf16.msra.mxu1 %v1222_v55  ;;  %v1233_v56 = vpop.permute.xlu1 %1232  ;;  %v1245_v57 = vpop.permute.xlu0 %1244 }
 0x2f2   : > { %v1235_v58 = vsel %vm442_vm8, %v2702_v6, %v1233_v56  ;;  %v1247_v60 = vsel %vm457_vm9, %v2720_v11, %v1245_v57  ;;  %vm3117_vm8 = vmmov %vm3116_vm7  ;;  %vm3118_vm9 = vcmask 908288  }
 0x2f3   : > { %1608 = vmatprep.subr.bf16.mxu1 %v1235_v58  ;;  %v1330_v32 = vsel %vm3117_vm8, %v2803_v38, %v2776_v27  ;;  %vm3131_vm8 = vcmask 859136  }
 0x2f5   : > { %1609 = vmatpush1.bf16.msra.mxu1 %v1234_v59  ;;  %v2841_v4 = vpop.permute.xlu1 %1360  ;;  %v2845_v61 = vpop.permute.xlu0 %1374 }
 0x2f6   : > { %1610 = vmatprep.subr.bf16.mxu1 %v1247_v60 }
 0x2f9   : > { %1611 = vmatpush1.bf16.msra.mxu1 %v1246_v62  ;;  %v1257_v63 = vpop.permute.xlu1 %1256  ;;  %v1269_v3 = vpop.permute.xlu0 %1268 }
 0x2fa   : > { %v1259_v0 = vsel %vm472_vm10, %v2718_v10, %v1257_v63  ;;  %v1271_v1 = vsel %vm487_vm12, %v2736_v15, %v1269_v3  ;;  %v1282_v10 = vsel %vm3111_vm2, %v2742_v16, %v2734_v14  ;;  %v1294_v15 = vsel %vm517_vm14, %v2760_v21, %v2752_v19  ;;  %v1977_v21 = vld [vmem:[%s2999_s2] ss:$16 sps:$4 sm:$0xff]   ;;  %vm3119_vm10 = vmmov %vm3116_vm7 }
 0x2fb   : > { %1612 = vmatprep.subr.bf16.mxu1 %v1259_v0  ;;  %vm3120_vm12 = vmmov %vm3118_vm9  ;;  %vm3125_vm2 = vcmask 883712  }
 0x2fc   : > { %v1342_v34 = vsel %vm3120_vm12, %v2813_v44, %v2799_v36 }
 0x2fd   : > { %1613 = vmatpush1.bf16.msra.mxu1 %v1258_v5  ;;  %v2855_v2 = vpop.permute.xlu1 %1386  ;;  %v1373_v6 = vpop.permute.xlu0 %1372 }
 0x2fe   : > { %1614 = vmatprep.subr.bf16.mxu1 %v1271_v1 }
 0x301   : > { %1615 = vmatpush1.bf16.msra.mxu1 %v1270_v7  ;;  %v1281_v8 = vpop.permute.xlu1 %1280  ;;  %v1293_v9 = vpop.permute.xlu0 %1292 }
 0x302   : > { %v1283_v11 = vsel %vm3110_vm1, %v2734_v14, %v1281_v8  ;;  %v1295_v13 = vsel %vm517_vm14, %v2752_v19, %v1293_v9  ;;  %v1306_v14 = vsel %vm3113_vm4, %v2758_v20, %v2750_v18  ;;  %v1318_v19 = vsel %vm3115_vm6, %v2774_v26, %v2766_v22  ;;  %vm3124_vm1 = vmmov %vm3123_vm15 }
 0x303   : > { %1616 = vmatprep.subr.bf16.mxu1 %v1283_v11  ;;  %vm3121_vm14 = vcmask 900096   ;;  %vm3127_vm4 = vcmask 875520   ;;  %vm3129_vm6 = vcmask 867328  }
 0x304   : > { %vm3122_vm0 = vmmov %vm3121_vm14 }
 0x305   : > { %1617 = vmatpush1.bf16.msra.mxu1 %v1282_v10  ;;  %v1385_v12 = vpop.permute.xlu1 %1384  ;;  %v1399_v24 = vpop.permute.xlu0 %1398  ;;  %v1354_v38 = vsel %vm3122_vm0, %v2831_v54, %v2817_v46 }
 0x306   : > { %1618 = vmatprep.subr.bf16.mxu1 %v1295_v13 }
 0x309   : > { %1619 = vmatpush1.bf16.msra.mxu1 %v1294_v15  ;;  %v1305_v17 = vpop.permute.xlu1 %1304  ;;  %v1317_v25 = vpop.permute.xlu0 %1316 }
 0x30a   : > { %v1307_v23 = vsel %vm3112_vm3, %v2750_v18, %v1305_v17  ;;  %v1319_v28 = vsel %vm3114_vm5, %v2766_v22, %v1317_v25  ;;  %v1980_v18 = vld [vmem:[%s2999_s2 + $0xc] ss:$16 sps:$4 sm:$0xff]   ;;  %vm3126_vm3 = vmmov %vm3125_vm2 }
 0x30b   : > { %1620 = vmatprep.subr.bf16.mxu1 %v1307_v23  ;;  %v1378_v45 = vsel %vm3126_vm3, %v1373_v6, %v2845_v61  ;;  %vm3128_vm5 = vmmov %vm3127_vm4 }
 0x30c   : > { %v1390_v49 = vsel %vm3128_vm5, %v1385_v12, %v2855_v2 }
 0x30d   : > { %1621 = vmatpush1.bf16.msra.mxu1 %v1306_v14  ;;  %v1411_v16 = vpop.permute.xlu1 %1410  ;;  %v1397_v29 = vpop.permute.xlu0 %1396 }
 0x30e   : > { %1622 = vmatprep.subr.bf16.mxu1 %v1319_v28 }
 0x311   : > { %1623 = vmatpush1.bf16.msra.mxu1 %v1318_v19  ;;  %v1329_v30 = vpop.permute.xlu1 %1328  ;;  %v1341_v31 = vpop.permute.xlu0 %1340 }
 0x312   : > { %v1331_v20 = vsel %vm3116_vm7, %v2776_v27, %v1329_v30  ;;  %v1343_v26 = vsel %vm3118_vm9, %v2799_v36, %v1341_v31  ;;  %v1366_v36 = vsel %vm3124_vm1, %v2841_v4, %v2827_v52  ;;  %vm3130_vm7 = vmmov %vm3129_vm6 }
 0x313   : > { %1635 = vmatprep.subr.bf16.mxu1 %v1331_v20  ;;  %v1402_v53 = vsel %vm3130_vm7, %v1397_v29, %v1399_v24  ;;  %vm3132_vm9 = vmmov %vm3131_vm8  ;;  %v1982_v29 = vld [vmem:[%s2999_s2 + $0x8] ss:$16 sps:$4 sm:$0xff]  }
 0x314   : > { %1625 = vmatmul.mubr.bf16.vlgmr.msra.gmra.mrb[4].mxu1 %v1977_v21 }
 0x315   : > { %1636 = vmatpush1.bf16.msra.mxu1 %v1330_v32  ;;  %v1409_v22 = vpop.permute.xlu1 %1408  ;;  %v1423_v33 = vpop.permute.xlu0 %1422  ;;  %1836 = vmatprep.mubr.msk.bf16.mxu1 %vm3119_vm10, %v1980_v18  ;;  %vm3133_vm10 = vcmask 850944  }
 0x316   : > { %1637 = vmatprep.subr.bf16.mxu1 %v1343_v26  ;;  %v1414_v57 = vsel %vm3132_vm9, %v1409_v22, %v1411_v16  ;;  %vm3134_vm12 = vmmov %vm3133_vm10 }
 0x319   : > { %1638 = vmatpush1.bf16.msra.mxu1 %v1342_v34  ;;  %v1353_v35 = vpop.permute.xlu1 %1352  ;;  %v1365_v37 = vpop.permute.xlu0 %1364 }
 0x31a   : > { %v1355_v27 = vsel %vm3121_vm14, %v2817_v46, %v1353_v35  ;;  %v1367_v40 = vsel %vm3123_vm15, %v2827_v52, %v1365_v37  ;;  %vm3135_vm14 = vcmask 842752   ;;  %vm3137_vm15 = vcmask 834560  }
 0x31b   : > { %1639 = vmatprep.subr.bf16.mxu1 %v1355_v27  ;;  %vm3136_vm0 = vmmov %vm3135_vm14 }
 0x31c   : > { %vm3138_vm1 = vmmov %vm3137_vm15 }
 0x31d   : > { %1640 = vmatpush1.bf16.msra.mxu1 %v1354_v38  ;;  %v1435_v39 = vpop.permute.xlu1 %1434  ;;  %v1421_v41 = vpop.permute.xlu0 %1420 }
 0x31e   : > { %1641 = vmatprep.subr.bf16.mxu1 %v1367_v40  ;;  %v1426_v60 = vsel %vm3134_vm12, %v1421_v41, %v1423_v33 }
 0x321   : > { %1642 = vmatpush1.bf16.msra.mxu1 %v1366_v36  ;;  %v1377_v42 = vpop.permute.xlu1 %1376  ;;  %v1389_v43 = vpop.permute.xlu0 %1388 }
 0x322   : > { %v1379_v44 = vsel %vm3125_vm2, %v2845_v61, %v1377_v42  ;;  %v1391_v47 = vsel %vm3127_vm4, %v2855_v2, %v1389_v43  ;;  %vm3139_vm2 = vcmask 818176  }
 0x323   : > { %1643 = vmatprep.subr.bf16.mxu1 %v1379_v44  ;;  %vm3140_vm3 = vmmov %vm3139_vm2 }
 0x325   : > { %1644 = vmatpush1.bf16.msra.mxu1 %v1378_v45  ;;  %v1433_v46 = vpop.permute.xlu1 %1432  ;;  %v1447_v48 = vpop.permute.xlu0 %1446 }
 0x326   : > { %1645 = vmatprep.subr.bf16.mxu1 %v1391_v47  ;;  %v1438_v3 = vsel %vm3136_vm0, %v1433_v46, %v1435_v39 }
 0x329   : > { %1646 = vmatpush1.bf16.msra.mxu1 %v1390_v49  ;;  %v1401_v50 = vpop.permute.xlu1 %1400  ;;  %v1413_v51 = vpop.permute.xlu0 %1412 }
 0x32a   : > { %v1403_v52 = vsel %vm3129_vm6, %v1399_v24, %v1401_v50  ;;  %v1415_v55 = vsel %vm3131_vm8, %v1411_v16, %v1413_v51 }
 0x32b   : > { %1647 = vmatprep.subr.bf16.mxu1 %v1403_v52 }
 0x32d   : > { %1648 = vmatpush1.bf16.msra.mxu1 %v1402_v53  ;;  %v1459_v54 = vpop.permute.xlu1 %1458  ;;  %v1445_v56 = vpop.permute.xlu0 %1444 }
 0x32e   : > { %1649 = vmatprep.subr.bf16.mxu1 %v1415_v55  ;;  %v1450_v1 = vsel %vm3138_vm1, %v1445_v56, %v1447_v48 }
 0x331   : > { %1650 = vmatpush1.bf16.msra.mxu1 %v1414_v57  ;;  %v1425_v58 = vpop.permute.xlu1 %1424  ;;  %v1437_v59 = vpop.permute.xlu0 %1436 }
 0x332   : > { %v1427_v4 = vsel %vm3133_vm10, %v1423_v33, %v1425_v58  ;;  %v1439_v62 = vsel %vm3135_vm14, %v1435_v39, %v1437_v59 }
 0x333   : > { %1651 = vmatprep.subr.bf16.mxu1 %v1427_v4 }
 0x335   : > { %1652 = vmatpush1.bf16.msra.mxu1 %v1426_v60  ;;  %v1457_v61 = vpop.permute.xlu1 %1456  ;;  %v1471_v63 = vpop.permute.xlu0 %1470 }
 0x336   : > { %1653 = vmatprep.subr.bf16.mxu1 %v1439_v62  ;;  %v1462_v9 = vsel %vm727_vm11, %v1457_v61, %v1459_v54 }
 0x339   : > { %1654 = vmatpush1.bf16.msra.mxu1 %v1438_v3  ;;  %v1449_v0 = vpop.permute.xlu1 %1448  ;;  %v1461_v5 = vpop.permute.xlu0 %1460 }
 0x33a   : > { %v1451_v2 = vsel %vm3137_vm15, %v1447_v48, %v1449_v0  ;;  %v1463_v7 = vsel %vm727_vm11, %v1459_v54, %v1461_v5  ;;  %vm3141_vm11 = vcmask 801792  }
 0x33b   : > { %1655 = vmatprep.subr.bf16.mxu1 %v1451_v2  ;;  %vm3142_vm4 = vmmov %vm3141_vm11 }
 0x33d   : > { %1656 = vmatpush1.bf16.msra.mxu1 %v1450_v1  ;;  %v1483_v6 = vpop.permute.xlu1 %1482  ;;  %v1469_v8 = vpop.permute.xlu0 %1468 }
 0x33e   : > { %1657 = vmatprep.subr.bf16.mxu1 %v1463_v7  ;;  %v1474_v13 = vsel %vm3140_vm3, %v1469_v8, %v1471_v63 }
 0x341   : > { %1658 = vmatpush1.bf16.msra.mxu1 %v1462_v9  ;;  %v1473_v11 = vpop.permute.xlu1 %1472  ;;  %v1485_v10 = vpop.permute.xlu0 %1484 }
 0x342   : > { %v1475_v12 = vsel %vm3139_vm2, %v1471_v63, %v1473_v11  ;;  %v1487_v15 = vsel %vm757_vm13, %v1483_v6, %v1485_v10 }
 0x343   : > { %1659 = vmatprep.subr.bf16.mxu1 %v1475_v12 }
 0x345   : > { %1660 = vmatpush1.bf16.msra.mxu1 %v1474_v13  ;;  %v1481_v24 = vpop.permute.xlu1 %1480  ;;  %v1495_v17 = vpop.permute.xlu0 %1494 }
 0x346   : > { %v1486_v25 = vsel %vm757_vm13, %v1481_v24, %v1483_v6  ;;  %1661 = vmatprep.subr.bf16.mxu1 %v1487_v15 }
 0x349   : > { %1662 = vmatpush1.bf16.msra.mxu1 %v1486_v25  ;;  %v1497_v23 = vpop.permute.xlu1 %1496  ;;  %v1493_v14 = vpop.permute.xlu0 %1492 }
 0x34a   : > { %v1498_v16 = vsel %vm3141_vm11, %v1493_v14, %v1495_v17  ;;  %v1499_v28 = vsel %vm3142_vm4, %v1495_v17, %v1497_v23 }
 0x34b   : > { %1663 = vmatprep.subr.bf16.mxu1 %v1499_v28 }
 0x34d   : > { %1664 = vmatpush1.bf16.msra.mxu1 %v1498_v16 }
 0x350   : > { %1668 = vmatmul.mubr.bf16.vlgmr.msra.gmra.mrb[4].mxu1 %v1982_v29 }
 0x35a   : > { %v1683_v19 = vpop.permute.xlu1 %1682  ;;  %v1688_v21 = vpop.permute.xlu0 %1687 }
 0x35e   : > { %v1699_v20 = vpop.permute.xlu1 %1698  ;;  %v1704_v35 = vpop.permute.xlu0 %1703 }
 0x423   : > { %v1669_v30 = vpop.f32.mrb[4].mxu1 }
 0x424   : > { %v1690_v31 = vmul.f32 %v1683_v19, %v1669_v30  ;;  %v1671_v18 = vpop.f32.mrb[5].mxu1 }
 0x425   : > { %v1691_v32 = vmul.f32 %v1683_v19, %v1671_v18  ;;  %v1673_v22 = vpop.f32.mrb[6].mxu1 }
 0x426   : > { %v1706_v26 = vadd.f32 %v1699_v20, %v1690_v31  ;;  %v1692_v33 = vmul.f32 %v1688_v21, %v1673_v22  ;;  %v1675_v34 = vpop.f32.mrb[7].mxu1 }
 0x427   : > { %v1707_v37 = vadd.f32 %v1699_v20, %v1691_v32  ;;  %v1693_v27 = vmul.f32 %v1688_v21, %v1675_v34 }
 0x428   : > { %v1710_v38 = vmax.f32 %v1706_v26, 0.0  ;;  %v1708_v39 = vadd.f32 %v1704_v35, %v1692_v33 }
 0x429   : > { %v1711_v40 = vmax.f32 %v1707_v37, 0.0  ;;  %v1709_v41 = vadd.f32 %v1704_v35, %v1693_v27 }
 0x42a   : > { %1714 = vst [vmem:[%s295_s20] sm:$0xff] %v1710_v38  ;;  %v1712_v36 = vmax.f32 %v1708_v39, 0.0 }
 0x42b   : > { %1715 = vst [vmem:[%s295_s20 + $0x8] sm:$0xff] %v1711_v40  ;;  %v1713_v42 = vmax.f32 %v1709_v41, 0.0 }
 0x42c   : > { %1716 = vst [vmem:[%s295_s20 + $0x10] sm:$0xff] %v1712_v36 }
 0x42d   : > { %1717 = vst [vmem:[%s295_s20 + $0x18] sm:$0xff] %v1713_v42 }
 0x42e   : > { %1996 = shalt.err (!%p1993_p5)
}
 0x42f   : > { %s1997_s1 = scalar_lea.hbm %s2947_s17, 512  ;;  %s2001_s15 = scalar_lea.hbm %s3004_s7, 1024 }
 0x430   : > { %p1998_p6 = scmp.ne.s32.totalorder %s2947_s17, %s1997_s1  ;;  %p2002_p10 = scmp.lt.u32.totalorder %s2947_s17, %s3004_s7 }
 0x431   : > { %p2003_p11 = scmp.lt.u32.totalorder %s2001_s15, %s1997_s1  ;;  %p2005_p13 = scmp.lt.u32.totalorder %s1997_s1, %s2947_s17 }
 0x432   : > { %p1999_p7 = pnand %p1998_p6, %p2177_p4 }
 0x433   : > { %p2004_p12 = por %p2003_p11, %p2002_p10 }
 0x434   : > { %p2000_p9 = pneg %p1999_p7 }
 0x435   : > { %p2006_p0 = por %p2005_p13, %p2004_p12 }
 0x437   : > { %p2007_p1 = pnand %p2006_p0, %p2000_p9 }
 0x439   : > { %2010 = shalt.err (!%p2007_p1)
}
 0x43a   : > { %s2095_s20 = smov 256   ;;  %s2096_s0 = smov 16  }
 0x43b   : > { %1877 = dma.vmem_to_hbm [thread:$0]  (%p2177_p4), %s2942_s21, 512, %s2947_s17, %s2951_s27, %s2095_s20, %s2095_s20, %s2096_s0  }
 0x43c PF: > { %p1883_p2 = scmp.ge.s32.totalorder %s2061_s29, 2  ;;  %s1749_s3 = sand.u32 1, %s2041_s24  }
 0x43d   : > { %s1750_s12 = scalar_lea.sflag [#allocation5], %s1749_s3 }
 0x43e   : > { %p1880_p3 = pnand %p1883_p2, %p2184_p8 }
 0x440   : > { %2036 = dma.done.wait (!%p1880_p3), %s1750_s12, 512  }
 0x441   : > { %2038 = vsyncadd (!%p1880_p3), %s1750_s12, 4294966784  ;;  %s20_s29 = sadd.s32 1, %s2061_s29   ;;  %s3143_s24 = smov %s2045_s25 }
 0x442   : > { %p17_p5 = scmp.ge.s32.totalorder %s20_s29, 4   ;;  %s3144_s25 = smov %s2049_s26 }
 0x443   : > { %s3145_s26 = smov %s2190_s14  ;;  %s3146_s27 = smov %s2057_s28 }
 0x444   : > { %s3147_s28 = smov %s3149_s9  ;;  %19 = sbr.rel (!%p17_p5) target bundleno = 8 (0x8), region = 83 }
 0x44b   :  { %1755 = vsyncpa [#allocation5], 1 }
 0x44c   :  { %1757 = vsyncpa [#allocation5 + $0x1], 1 }

</bundles_post_ra>
